<compile_context>
chip_gen: v6e
topology: v6e:2x2x1
jax: 0.10.0
libtpu: 0.0.40
codegen_flags: <defaults>
</compile_context>

<pallas_src>
import functools

import numpy as np
import jax
import jax.numpy as jnp
from jax import lax
from jax.experimental import pallas as pl
from jax.experimental.pallas import tpu as pltpu

_EPS = 1e-5


# ----------------------------- Pallas kernel ------------------------------- #
def _dense_block_kernel(xpf_ref, wdw_ref, bdw_ref, wpw_ref, bpw_ref, mask_ref, out_ref,
                        *, num_convs, num_channels, c_in, wp):
    # xpf_ref : (1, C_in, S)                zero-halo-padded, spatially flattened input
    # wdw_ref : (num_convs, 9, C_total, 1)  BN-folded depthwise weights (zero-padded in C)
    # bdw_ref : (num_convs, C_total, 1)     BN-folded depthwise bias (zero-padded in C)
    # wpw_ref : (num_convs, Cout, C_total)  BN-folded pointwise weights (zero-padded in C)
    # bpw_ref : (num_convs, Cout, 1)        BN-folded pointwise bias
    # mask_ref: (1, S)                      1.0 at interior pixels, 0.0 at halo / lane tail
    # out_ref : (1, C_total, S)             resident concatenated feature map (== result)
    s = out_ref.shape[2]
    mask = mask_ref[...]                                       # (1, S)

    # Place the input channels; zero the not-yet-computed channels (they are read
    # below against zero-padded weights, so they must not hold stale VMEM garbage).
    out_ref[...] = jnp.zeros(out_ref.shape, jnp.float32)
    out_ref[0, 0:c_in, :] = xpf_ref[0]

    # flat-index offsets of the 9 taps on the (H+2, W+2) padded grid
    offs = [(dy - 1) * wp + (dx - 1) for dy in range(3) for dx in range(3)]

    for i in range(num_convs):                                 # static unroll over blocks
        feat = out_ref[0]                                      # (C_total, S) current concat
        # --- depthwise 3x3: per-channel weights, lane-rolled shifts (XLU) + FMAs (VPU)
        acc = feat * wdw_ref[i, 4]                             # centre tap (offset 0)
        for t, off in enumerate(offs):
            if off == 0:
                continue
            acc = acc + pltpu.roll(feat, shift=(-off) % s, axis=1) * wdw_ref[i, t]
        # (wrapped roll elements only ever land on halo/tail positions -> re-zeroed by mask)
        dw = jnp.maximum(acc + bdw_ref[i], 0.0) * mask         # folded BN bias, ReLU
        # --- pointwise 1x1 conv == channel matmul, lane-dense in S (MXU)
        pw = jnp.dot(wpw_ref[i], dw, preferred_element_type=jnp.float32)   # (Cout, S)
        y = jnp.maximum(pw + bpw_ref[i], 0.0) * mask           # keep halo exactly zero
        c0 = c_in + i * num_channels
        out_ref[0, c0:c0 + num_channels, :] = y                # dense concat, stays in VMEM


# ------------------------------ wrapper ------------------------------------- #
def dense_block_forward(x_nchw, params):
    """DenseBlock.forward (eval-mode BN), fully fused into one pallas_call."""
    N, C_in, H, W = x_nchw.shape
    num_convs = len(params)
    num_channels = params[0]["w_pw"].shape[0]
    C_total = C_in + num_convs * num_channels
    HP, WP = H + 2, W + 2
    S_img = HP * WP
    S = ((S_img + 127) // 128) * 128                 # lane-align the flattened spatial axis

    # one-time halo pad of the input, flattened spatially, tail-padded to S lanes
    xpf = jnp.pad(x_nchw, ((0, 0), (0, 0), (1, 1), (1, 1))).reshape(N, C_in, S_img)
    xpf = jnp.pad(xpf, ((0, 0), (0, 0), (0, S - S_img)))

    # interior mask: 1 at real pixels, 0 at halo / lane tail
    mask = jnp.pad(jnp.ones((H, W), jnp.float32), ((1, 1), (1, 1))).reshape(1, S_img)
    mask = jnp.pad(mask, ((0, 0), (0, S - S_img)))

    # hoisted BN folding + packing for all blocks (channel dim zero-padded to C_total)
    wdw_l, bdw_l, wpw_l, bpw_l = [], [], [], []
    for i, p in enumerate(params):
        cin = C_in + i * num_channels
        sd = p["bn_d_gamma"] / jnp.sqrt(p["bn_d_var"] + _EPS)
        w_dw = p["w_dw"][:, 0, :, :] * sd[:, None, None]                    # (cin, 3, 3)
        b_dw = (p["b_dw"] - p["bn_d_mean"]) * sd + p["bn_d_beta"]           # (cin,)
        sp = p["bn_p_gamma"] / jnp.sqrt(p["bn_p_var"] + _EPS)
        w_pw = p["w_pw"][:, :, 0, 0] * sp[:, None]                          # (cout, cin)
        b_pw = (p["b_pw"] - p["bn_p_mean"]) * sp + p["bn_p_beta"]           # (cout,)

        w9 = jnp.pad(w_dw.reshape(cin, 9).T, ((0, 0), (0, C_total - cin)))  # (9, C_total)
        wdw_l.append(w9[:, :, None])                                        # (9, C_total, 1)
        bdw_l.append(jnp.pad(b_dw, (0, C_total - cin))[:, None])            # (C_total, 1)
        wpw_l.append(jnp.pad(w_pw, ((0, 0), (0, C_total - cin))))           # (cout, C_total)
        bpw_l.append(b_pw[:, None])                                         # (cout, 1)

    wdw_all = jnp.stack(wdw_l)        # (num_convs, 9, C_total, 1)
    bdw_all = jnp.stack(bdw_l)        # (num_convs, C_total, 1)
    wpw_all = jnp.stack(wpw_l)        # (num_convs, cout, C_total)
    bpw_all = jnp.stack(bpw_l)        # (num_convs, cout, 1)

    kernel = functools.partial(_dense_block_kernel, num_convs=num_convs,
                               num_channels=num_channels, c_in=C_in, wp=WP)

    out_flat = pl.pallas_call(
        kernel,
        out_shape=jax.ShapeDtypeStruct((N, C_total, S), jnp.float32),
        grid=(N,),                      # batch-parallel: keeps both v7x TensorCores busy
        in_specs=[
            pl.BlockSpec((1, C_in, S), lambda n: (n, 0, 0)),
            pl.BlockSpec((num_convs, 9, C_total, 1), lambda n: (0, 0, 0, 0)),
            pl.BlockSpec((num_convs, C_total, 1), lambda n: (0, 0, 0)),
            pl.BlockSpec((num_convs, num_channels, C_total), lambda n: (0, 0, 0)),
            pl.BlockSpec((num_convs, num_channels, 1), lambda n: (0, 0, 0)),
            pl.BlockSpec((1, S), lambda n: (0, 0)),
        ],
        out_specs=pl.BlockSpec((1, C_total, S), lambda n: (n, 0, 0)),
        compiler_params=pltpu.CompilerParams(dimension_semantics=("parallel",)),
    )(xpf, wdw_all, bdw_all, wpw_all, bpw_all, mask)

    # drop lane tail + halo -> NCHW
    out = out_flat[:, :, :S_img].reshape(N, C_total, HP, WP)[:, :, 1:H + 1, 1:W + 1]
    return out


# --------------------------- parameter handling ----------------------------- #
def init_dense_block_params(key, num_convs, input_channels, num_channels):
    """Deterministic params in PyTorch layouts: dw (C,1,3,3), pw (Cout,Cin,1,1)."""
    params = []
    for i in range(num_convs):
        cin = input_channels + num_channels * i
        cout = num_channels
        ks = jax.random.split(jax.random.fold_in(key, i), 10)
        params.append(dict(
            w_dw=jax.random.normal(ks[0], (cin, 1, 3, 3), jnp.float32) * 0.3,
            b_dw=jax.random.normal(ks[1], (cin,), jnp.float32) * 0.1,
            bn_d_gamma=jax.random.uniform(ks[2], (cin,), jnp.float32, 0.5, 1.5),
            bn_d_beta=jax.random.normal(ks[3], (cin,), jnp.float32) * 0.1,
            bn_d_mean=jax.random.normal(ks[4], (cin,), jnp.float32) * 0.1,
            bn_d_var=jax.random.uniform(ks[5], (cin,), jnp.float32, 0.5, 1.5),
            w_pw=jax.random.normal(ks[6], (cout, cin, 1, 1), jnp.float32) * 0.3,
            b_pw=jax.random.normal(ks[7], (cout,), jnp.float32) * 0.1,
            bn_p_gamma=jax.random.uniform(ks[8], (cout,), jnp.float32, 0.5, 1.5),
            bn_p_beta=jax.random.normal(ks[9], (cout,), jnp.float32) * 0.1,
            bn_p_mean=jax.random.normal(jax.random.fold_in(ks[9], 1), (cout,), jnp.float32) * 0.1,
            bn_p_var=jax.random.uniform(jax.random.fold_in(ks[9], 2), (cout,), jnp.float32, 0.5, 1.5),
        ))
    return params


# ------------------------------ JAX reference ------------------------------- #
def _dsconv_ref(x, p):
    cin = x.shape[1]
    y = lax.conv_general_dilated(x, p["w_dw"], (1, 1), ((1, 1), (1, 1)),
                                 feature_group_count=cin,
                                 dimension_numbers=("NCHW", "OIHW", "NCHW"))
    y = y + p["b_dw"][None, :, None, None]
    y = (y - p["bn_d_mean"][None, :, None, None]) / jnp.sqrt(p["bn_d_var"] + _EPS)[None, :, None, None]
    y = y * p["bn_d_gamma"][None, :, None, None] + p["bn_d_beta"][None, :, None, None]
    y = jnp.maximum(y, 0.0)
    z = lax.conv_general_dilated(y, p["w_pw"], (1, 1), ((0, 0), (0, 0)),
                                 dimension_numbers=("NCHW", "OIHW", "NCHW"))
    z = z + p["b_pw"][None, :, None, None]
    z = (z - p["bn_p_mean"][None, :, None, None]) / jnp.sqrt(p["bn_p_var"] + _EPS)[None, :, None, None]
    z = z * p["bn_p_gamma"][None, :, None, None] + p["bn_p_beta"][None, :, None, None]
    return jnp.maximum(z, 0.0)


def dense_block_ref(x_nchw, params):
    x = x_nchw
    for p in params:
        y = _dsconv_ref(x, p)
        x = jnp.concatenate([x, y], axis=1)
    return x


# ---------------------------------- main ------------------------------------ #
if __name__ == "__main__":
    key = jax.random.PRNGKey(0)
    k_x, k_p = jax.random.split(key)

    N, C_in, H, W = 2, 4, 16, 16
    num_convs, num_channels = 3, 4

    x = jax.random.normal(k_x, (N, C_in, H, W), jnp.float32)
    params = init_dense_block_params(k_p, num_convs, C_in, num_channels)

    out = dense_block_forward(x, params)
    out = jax.block_until_ready(out)

    expected_c = C_in + num_convs * num_channels
    assert out.shape == (N, expected_c, H, W), out.shape

    ref = jax.block_until_ready(dense_block_ref(x, params))
    assert np.allclose(np.asarray(out), np.asarray(ref), rtol=1e-2, atol=1e-2), \
        "Pallas output does not match JAX reference"

    print("KERNEL_OK")
</pallas_src>

<mosaic_0001>
module attributes {stable_mosaic.version = 11 : i64} {
  func.func @_dense_block_kernel(%arg0: i32, %arg1: memref<1x4x384xf32, #tpu.memory_space<vmem>>, %arg2: memref<3x9x16x1xf32, #tpu.memory_space<vmem>>, %arg3: memref<3x16x1xf32, #tpu.memory_space<vmem>>, %arg4: memref<3x4x16xf32, #tpu.memory_space<vmem>>, %arg5: memref<3x4x1xf32, #tpu.memory_space<vmem>>, %arg6: memref<1x384xf32, #tpu.memory_space<vmem>>, %arg7: memref<1x16x384xf32, #tpu.memory_space<vmem>>) attributes {dimension_semantics = [#tpu.dimension_semantics<parallel>], iteration_bounds = array<i64: 2>, scalar_prefetch = 0 : i64, scratch_operands = 0 : i64, tpu.core_type = #tpu.core_type<tc>, window_params = [{transform_indices = @transform_0, window_bounds = array<i64: 1, 4, 384>}, {pipeline_mode = #tpu.pipeline_mode<synchronous>, transform_indices = @transform_1, window_bounds = array<i64: 3, 9, 16, 1>}, {pipeline_mode = #tpu.pipeline_mode<synchronous>, transform_indices = @transform_2, window_bounds = array<i64: 3, 16, 1>}, {pipeline_mode = #tpu.pipeline_mode<synchronous>, transform_indices = @transform_3, window_bounds = array<i64: 3, 4, 16>}, {pipeline_mode = #tpu.pipeline_mode<synchronous>, transform_indices = @transform_4, window_bounds = array<i64: 3, 4, 1>}, {pipeline_mode = #tpu.pipeline_mode<synchronous>, transform_indices = @transform_5, window_bounds = array<i64: 1, 384>}, {transform_indices = @transform_6, window_bounds = array<i64: 1, 16, 384>}]} {
    %c0 = arith.constant 0 : index
    %c0_0 = arith.constant 0 : index
    %0 = vector.load %arg6[%c0, %c0_0] : memref<1x384xf32, #tpu.memory_space<vmem>>, vector<1x384xf32>
    %cst = arith.constant 0.000000e+00 : f32
    %1 = vector.broadcast %cst : f32 to vector<1x16x384xf32>
    %c0_1 = arith.constant 0 : index
    %c0_2 = arith.constant 0 : index
    %c0_3 = arith.constant 0 : index
    %2 = vector.load %arg7[%c0_1, %c0_2, %c0_3] : memref<1x16x384xf32, #tpu.memory_space<vmem>>, vector<1x16x384xf32>
    tpu.vector_store %arg7[%c0_1, %c0_2, %c0_3], %1 {strides = array<i32>} : memref<1x16x384xf32, #tpu.memory_space<vmem>>, vector<1x16x384xf32>,
    %c0_4 = arith.constant 0 : index
    %c0_5 = arith.constant 0 : index
    %c0_6 = arith.constant 0 : index
    %3 = vector.load %arg1[%c0_4, %c0_5, %c0_6] : memref<1x4x384xf32, #tpu.memory_space<vmem>>, vector<1x4x384xf32>
    %4 = vector.shape_cast %3 : vector<1x4x384xf32> to vector<4x384xf32>
    %c0_7 = arith.constant 0 : index
    %c0_8 = arith.constant 0 : index
    %c0_9 = arith.constant 0 : index
    %5 = vector.load %arg7[%c0_7, %c0_8, %c0_9] : memref<1x16x384xf32, #tpu.memory_space<vmem>>, vector<1x4x384xf32>
    %6 = vector.shape_cast %5 : vector<1x4x384xf32> to vector<4x384xf32>
    %7 = vector.shape_cast %4 : vector<4x384xf32> to vector<1x4x384xf32>
    tpu.vector_store %arg7[%c0_7, %c0_8, %c0_9], %7 {strides = array<i32>} : memref<1x16x384xf32, #tpu.memory_space<vmem>>, vector<1x4x384xf32>,
    %c0_10 = arith.constant 0 : index
    %c0_11 = arith.constant 0 : index
    %c0_12 = arith.constant 0 : index
    %8 = vector.load %arg7[%c0_10, %c0_11, %c0_12] : memref<1x16x384xf32, #tpu.memory_space<vmem>>, vector<1x16x384xf32>
    %9 = vector.shape_cast %8 : vector<1x16x384xf32> to vector<16x384xf32>
    %c0_13 = arith.constant 0 : index
    %c4 = arith.constant 4 : index
    %c0_14 = arith.constant 0 : index
    %c0_15 = arith.constant 0 : index
    %10 = vector.load %arg2[%c0_13, %c4, %c0_14, %c0_15] : memref<3x9x16x1xf32, #tpu.memory_space<vmem>>, vector<1x1x16x1xf32>
    %11 = vector.shape_cast %10 : vector<1x1x16x1xf32> to vector<16x1xf32>
    %12 = vector.broadcast %11 : vector<16x1xf32> to vector<16x384xf32>
    %13 = arith.mulf %9, %12 : vector<16x384xf32>
    %c19_i32 = arith.constant 19 : i32
    %14 = tpu.dynamic_rotate %9 by %c19_i32 dim 1 : vector<16x384xf32>, i32 -> vector<16x384xf32>
    %c0_16 = arith.constant 0 : index
    %c0_17 = arith.constant 0 : index
    %c0_18 = arith.constant 0 : index
    %c0_19 = arith.constant 0 : index
    %15 = vector.load %arg2[%c0_16, %c0_17, %c0_18, %c0_19] : memref<3x9x16x1xf32, #tpu.memory_space<vmem>>, vector<1x1x16x1xf32>
    %16 = vector.shape_cast %15 : vector<1x1x16x1xf32> to vector<16x1xf32>
    %17 = vector.broadcast %16 : vector<16x1xf32> to vector<16x384xf32>
    %18 = arith.mulf %14, %17 : vector<16x384xf32>
    %19 = arith.addf %13, %18 : vector<16x384xf32>
    %c18_i32 = arith.constant 18 : i32
    %20 = tpu.dynamic_rotate %9 by %c18_i32 dim 1 : vector<16x384xf32>, i32 -> vector<16x384xf32>
    %c0_20 = arith.constant 0 : index
    %c1 = arith.constant 1 : index
    %c0_21 = arith.constant 0 : index
    %c0_22 = arith.constant 0 : index
    %21 = vector.load %arg2[%c0_20, %c1, %c0_21, %c0_22] : memref<3x9x16x1xf32, #tpu.memory_space<vmem>>, vector<1x1x16x1xf32>
    %22 = vector.shape_cast %21 : vector<1x1x16x1xf32> to vector<16x1xf32>
    %23 = vector.broadcast %22 : vector<16x1xf32> to vector<16x384xf32>
    %24 = arith.mulf %20, %23 : vector<16x384xf32>
    %25 = arith.addf %19, %24 : vector<16x384xf32>
    %c17_i32 = arith.constant 17 : i32
    %26 = tpu.dynamic_rotate %9 by %c17_i32 dim 1 : vector<16x384xf32>, i32 -> vector<16x384xf32>
    %c0_23 = arith.constant 0 : index
    %c2 = arith.constant 2 : index
    %c0_24 = arith.constant 0 : index
    %c0_25 = arith.constant 0 : index
    %27 = vector.load %arg2[%c0_23, %c2, %c0_24, %c0_25] : memref<3x9x16x1xf32, #tpu.memory_space<vmem>>, vector<1x1x16x1xf32>
    %28 = vector.shape_cast %27 : vector<1x1x16x1xf32> to vector<16x1xf32>
    %29 = vector.broadcast %28 : vector<16x1xf32> to vector<16x384xf32>
    %30 = arith.mulf %26, %29 : vector<16x384xf32>
    %31 = arith.addf %25, %30 : vector<16x384xf32>
    %c1_i32 = arith.constant 1 : i32
    %32 = tpu.dynamic_rotate %9 by %c1_i32 dim 1 : vector<16x384xf32>, i32 -> vector<16x384xf32>
    %c0_26 = arith.constant 0 : index
    %c3 = arith.constant 3 : index
    %c0_27 = arith.constant 0 : index
    %c0_28 = arith.constant 0 : index
    %33 = vector.load %arg2[%c0_26, %c3, %c0_27, %c0_28] : memref<3x9x16x1xf32, #tpu.memory_space<vmem>>, vector<1x1x16x1xf32>
    %34 = vector.shape_cast %33 : vector<1x1x16x1xf32> to vector<16x1xf32>
    %35 = vector.broadcast %34 : vector<16x1xf32> to vector<16x384xf32>
    %36 = arith.mulf %32, %35 : vector<16x384xf32>
    %37 = arith.addf %31, %36 : vector<16x384xf32>
    %c383_i32 = arith.constant 383 : i32
    %38 = tpu.dynamic_rotate %9 by %c383_i32 dim 1 : vector<16x384xf32>, i32 -> vector<16x384xf32>
    %c0_29 = arith.constant 0 : index
    %c5 = arith.constant 5 : index
    %c0_30 = arith.constant 0 : index
    %c0_31 = arith.constant 0 : index
    %39 = vector.load %arg2[%c0_29, %c5, %c0_30, %c0_31] : memref<3x9x16x1xf32, #tpu.memory_space<vmem>>, vector<1x1x16x1xf32>
    %40 = vector.shape_cast %39 : vector<1x1x16x1xf32> to vector<16x1xf32>
    %41 = vector.broadcast %40 : vector<16x1xf32> to vector<16x384xf32>
    %42 = arith.mulf %38, %41 : vector<16x384xf32>
    %43 = arith.addf %37, %42 : vector<16x384xf32>
    %c367_i32 = arith.constant 367 : i32
    %44 = tpu.dynamic_rotate %9 by %c367_i32 dim 1 : vector<16x384xf32>, i32 -> vector<16x384xf32>
    %c0_32 = arith.constant 0 : index
    %c6 = arith.constant 6 : index
    %c0_33 = arith.constant 0 : index
    %c0_34 = arith.constant 0 : index
    %45 = vector.load %arg2[%c0_32, %c6, %c0_33, %c0_34] : memref<3x9x16x1xf32, #tpu.memory_space<vmem>>, vector<1x1x16x1xf32>
    %46 = vector.shape_cast %45 : vector<1x1x16x1xf32> to vector<16x1xf32>
    %47 = vector.broadcast %46 : vector<16x1xf32> to vector<16x384xf32>
    %48 = arith.mulf %44, %47 : vector<16x384xf32>
    %49 = arith.addf %43, %48 : vector<16x384xf32>
    %c366_i32 = arith.constant 366 : i32
    %50 = tpu.dynamic_rotate %9 by %c366_i32 dim 1 : vector<16x384xf32>, i32 -> vector<16x384xf32>
    %c0_35 = arith.constant 0 : index
    %c7 = arith.constant 7 : index
    %c0_36 = arith.constant 0 : index
    %c0_37 = arith.constant 0 : index
    %51 = vector.load %arg2[%c0_35, %c7, %c0_36, %c0_37] : memref<3x9x16x1xf32, #tpu.memory_space<vmem>>, vector<1x1x16x1xf32>
    %52 = vector.shape_cast %51 : vector<1x1x16x1xf32> to vector<16x1xf32>
    %53 = vector.broadcast %52 : vector<16x1xf32> to vector<16x384xf32>
    %54 = arith.mulf %50, %53 : vector<16x384xf32>
    %55 = arith.addf %49, %54 : vector<16x384xf32>
    %c365_i32 = arith.constant 365 : i32
    %56 = tpu.dynamic_rotate %9 by %c365_i32 dim 1 : vector<16x384xf32>, i32 -> vector<16x384xf32>
    %c0_38 = arith.constant 0 : index
    %c8 = arith.constant 8 : index
    %c0_39 = arith.constant 0 : index
    %c0_40 = arith.constant 0 : index
    %57 = vector.load %arg2[%c0_38, %c8, %c0_39, %c0_40] : memref<3x9x16x1xf32, #tpu.memory_space<vmem>>, vector<1x1x16x1xf32>
    %58 = vector.shape_cast %57 : vector<1x1x16x1xf32> to vector<16x1xf32>
    %59 = vector.broadcast %58 : vector<16x1xf32> to vector<16x384xf32>
    %60 = arith.mulf %56, %59 : vector<16x384xf32>
    %61 = arith.addf %55, %60 : vector<16x384xf32>
    %c0_41 = arith.constant 0 : index
    %c0_42 = arith.constant 0 : index
    %c0_43 = arith.constant 0 : index
    %62 = vector.load %arg3[%c0_41, %c0_42, %c0_43] : memref<3x16x1xf32, #tpu.memory_space<vmem>>, vector<1x16x1xf32>
    %63 = vector.shape_cast %62 : vector<1x16x1xf32> to vector<16x1xf32>
    %64 = vector.broadcast %63 : vector<16x1xf32> to vector<16x384xf32>
    %65 = arith.addf %61, %64 : vector<16x384xf32>
    %cst_44 = arith.constant 0.000000e+00 : f32
    %66 = vector.broadcast %cst_44 : f32 to vector<16x384xf32>
    %67 = arith.maximumf %65, %66 : vector<16x384xf32>
    %68 = vector.broadcast %0 : vector<1x384xf32> to vector<16x384xf32>
    %69 = arith.mulf %67, %68 : vector<16x384xf32>
    %c0_45 = arith.constant 0 : index
    %c0_46 = arith.constant 0 : index
    %c0_47 = arith.constant 0 : index
    %70 = vector.load %arg4[%c0_45, %c0_46, %c0_47] : memref<3x4x16xf32, #tpu.memory_space<vmem>>, vector<1x4x16xf32>
    %71 = vector.shape_cast %70 : vector<1x4x16xf32> to vector<4x16xf32>
    %cst_48 = arith.constant dense<0.000000e+00> : vector<4x384xf32>
    %72 = tpu.matmul %71, %69, %cst_48 {dimension_numbers = #tpu.dot_dimension_numbers<[1], [0], [0], [1], [0, 0, 1, 1], [], []>} : vector<4x16xf32>, vector<16x384xf32>, vector<4x384xf32> -> vector<4x384xf32>
    %c0_49 = arith.constant 0 : index
    %c0_50 = arith.constant 0 : index
    %c0_51 = arith.constant 0 : index
    %73 = vector.load %arg5[%c0_49, %c0_50, %c0_51] : memref<3x4x1xf32, #tpu.memory_space<vmem>>, vector<1x4x1xf32>
    %74 = vector.shape_cast %73 : vector<1x4x1xf32> to vector<4x1xf32>
    %75 = vector.broadcast %74 : vector<4x1xf32> to vector<4x384xf32>
    %76 = arith.addf %72, %75 : vector<4x384xf32>
    %cst_52 = arith.constant 0.000000e+00 : f32
    %77 = vector.broadcast %cst_52 : f32 to vector<4x384xf32>
    %78 = arith.maximumf %76, %77 : vector<4x384xf32>
    %79 = vector.broadcast %0 : vector<1x384xf32> to vector<4x384xf32>
    %80 = arith.mulf %78, %79 : vector<4x384xf32>
    %c0_53 = arith.constant 0 : index
    %c4_54 = arith.constant 4 : index
    %c0_55 = arith.constant 0 : index
    %81 = vector.load %arg7[%c0_53, %c4_54, %c0_55] : memref<1x16x384xf32, #tpu.memory_space<vmem>>, vector<1x4x384xf32>
    %82 = vector.shape_cast %81 : vector<1x4x384xf32> to vector<4x384xf32>
    %83 = vector.shape_cast %80 : vector<4x384xf32> to vector<1x4x384xf32>
    tpu.vector_store %arg7[%c0_53, %c4_54, %c0_55], %83 {strides = array<i32>} : memref<1x16x384xf32, #tpu.memory_space<vmem>>, vector<1x4x384xf32>,
    %c0_56 = arith.constant 0 : index
    %c0_57 = arith.constant 0 : index
    %c0_58 = arith.constant 0 : index
    %84 = vector.load %arg7[%c0_56, %c0_57, %c0_58] : memref<1x16x384xf32, #tpu.memory_space<vmem>>, vector<1x16x384xf32>
    %85 = vector.shape_cast %84 : vector<1x16x384xf32> to vector<16x384xf32>
    %c1_59 = arith.constant 1 : index
    %c4_60 = arith.constant 4 : index
    %c0_61 = arith.constant 0 : index
    %c0_62 = arith.constant 0 : index
    %86 = vector.load %arg2[%c1_59, %c4_60, %c0_61, %c0_62] : memref<3x9x16x1xf32, #tpu.memory_space<vmem>>, vector<1x1x16x1xf32>
    %87 = vector.shape_cast %86 : vector<1x1x16x1xf32> to vector<16x1xf32>
    %88 = vector.broadcast %87 : vector<16x1xf32> to vector<16x384xf32>
    %89 = arith.mulf %85, %88 : vector<16x384xf32>
    %c19_i32_63 = arith.constant 19 : i32
    %90 = tpu.dynamic_rotate %85 by %c19_i32_63 dim 1 : vector<16x384xf32>, i32 -> vector<16x384xf32>
    %c1_64 = arith.constant 1 : index
    %c0_65 = arith.constant 0 : index
    %c0_66 = arith.constant 0 : index
    %c0_67 = arith.constant 0 : index
    %91 = vector.load %arg2[%c1_64, %c0_65, %c0_66, %c0_67] : memref<3x9x16x1xf32, #tpu.memory_space<vmem>>, vector<1x1x16x1xf32>
    %92 = vector.shape_cast %91 : vector<1x1x16x1xf32> to vector<16x1xf32>
    %93 = vector.broadcast %92 : vector<16x1xf32> to vector<16x384xf32>
    %94 = arith.mulf %90, %93 : vector<16x384xf32>
    %95 = arith.addf %89, %94 : vector<16x384xf32>
    %c18_i32_68 = arith.constant 18 : i32
    %96 = tpu.dynamic_rotate %85 by %c18_i32_68 dim 1 : vector<16x384xf32>, i32 -> vector<16x384xf32>
    %c1_69 = arith.constant 1 : index
    %c1_70 = arith.constant 1 : index
    %c0_71 = arith.constant 0 : index
    %c0_72 = arith.constant 0 : index
    %97 = vector.load %arg2[%c1_69, %c1_70, %c0_71, %c0_72] : memref<3x9x16x1xf32, #tpu.memory_space<vmem>>, vector<1x1x16x1xf32>
    %98 = vector.shape_cast %97 : vector<1x1x16x1xf32> to vector<16x1xf32>
    %99 = vector.broadcast %98 : vector<16x1xf32> to vector<16x384xf32>
    %100 = arith.mulf %96, %99 : vector<16x384xf32>
    %101 = arith.addf %95, %100 : vector<16x384xf32>
    %c17_i32_73 = arith.constant 17 : i32
    %102 = tpu.dynamic_rotate %85 by %c17_i32_73 dim 1 : vector<16x384xf32>, i32 -> vector<16x384xf32>
    %c1_74 = arith.constant 1 : index
    %c2_75 = arith.constant 2 : index
    %c0_76 = arith.constant 0 : index
    %c0_77 = arith.constant 0 : index
    %103 = vector.load %arg2[%c1_74, %c2_75, %c0_76, %c0_77] : memref<3x9x16x1xf32, #tpu.memory_space<vmem>>, vector<1x1x16x1xf32>
    %104 = vector.shape_cast %103 : vector<1x1x16x1xf32> to vector<16x1xf32>
    %105 = vector.broadcast %104 : vector<16x1xf32> to vector<16x384xf32>
    %106 = arith.mulf %102, %105 : vector<16x384xf32>
    %107 = arith.addf %101, %106 : vector<16x384xf32>
    %c1_i32_78 = arith.constant 1 : i32
    %108 = tpu.dynamic_rotate %85 by %c1_i32_78 dim 1 : vector<16x384xf32>, i32 -> vector<16x384xf32>
    %c1_79 = arith.constant 1 : index
    %c3_80 = arith.constant 3 : index
    %c0_81 = arith.constant 0 : index
    %c0_82 = arith.constant 0 : index
    %109 = vector.load %arg2[%c1_79, %c3_80, %c0_81, %c0_82] : memref<3x9x16x1xf32, #tpu.memory_space<vmem>>, vector<1x1x16x1xf32>
    %110 = vector.shape_cast %109 : vector<1x1x16x1xf32> to vector<16x1xf32>
    %111 = vector.broadcast %110 : vector<16x1xf32> to vector<16x384xf32>
    %112 = arith.mulf %108, %111 : vector<16x384xf32>
    %113 = arith.addf %107, %112 : vector<16x384xf32>
    %c383_i32_83 = arith.constant 383 : i32
    %114 = tpu.dynamic_rotate %85 by %c383_i32_83 dim 1 : vector<16x384xf32>, i32 -> vector<16x384xf32>
    %c1_84 = arith.constant 1 : index
    %c5_85 = arith.constant 5 : index
    %c0_86 = arith.constant 0 : index
    %c0_87 = arith.constant 0 : index
    %115 = vector.load %arg2[%c1_84, %c5_85, %c0_86, %c0_87] : memref<3x9x16x1xf32, #tpu.memory_space<vmem>>, vector<1x1x16x1xf32>
    %116 = vector.shape_cast %115 : vector<1x1x16x1xf32> to vector<16x1xf32>
    %117 = vector.broadcast %116 : vector<16x1xf32> to vector<16x384xf32>
    %118 = arith.mulf %114, %117 : vector<16x384xf32>
    %119 = arith.addf %113, %118 : vector<16x384xf32>
    %c367_i32_88 = arith.constant 367 : i32
    %120 = tpu.dynamic_rotate %85 by %c367_i32_88 dim 1 : vector<16x384xf32>, i32 -> vector<16x384xf32>
    %c1_89 = arith.constant 1 : index
    %c6_90 = arith.constant 6 : index
    %c0_91 = arith.constant 0 : index
    %c0_92 = arith.constant 0 : index
    %121 = vector.load %arg2[%c1_89, %c6_90, %c0_91, %c0_92] : memref<3x9x16x1xf32, #tpu.memory_space<vmem>>, vector<1x1x16x1xf32>
    %122 = vector.shape_cast %121 : vector<1x1x16x1xf32> to vector<16x1xf32>
    %123 = vector.broadcast %122 : vector<16x1xf32> to vector<16x384xf32>
    %124 = arith.mulf %120, %123 : vector<16x384xf32>
    %125 = arith.addf %119, %124 : vector<16x384xf32>
    %c366_i32_93 = arith.constant 366 : i32
    %126 = tpu.dynamic_rotate %85 by %c366_i32_93 dim 1 : vector<16x384xf32>, i32 -> vector<16x384xf32>
    %c1_94 = arith.constant 1 : index
    %c7_95 = arith.constant 7 : index
    %c0_96 = arith.constant 0 : index
    %c0_97 = arith.constant 0 : index
    %127 = vector.load %arg2[%c1_94, %c7_95, %c0_96, %c0_97] : memref<3x9x16x1xf32, #tpu.memory_space<vmem>>, vector<1x1x16x1xf32>
    %128 = vector.shape_cast %127 : vector<1x1x16x1xf32> to vector<16x1xf32>
    %129 = vector.broadcast %128 : vector<16x1xf32> to vector<16x384xf32>
    %130 = arith.mulf %126, %129 : vector<16x384xf32>
    %131 = arith.addf %125, %130 : vector<16x384xf32>
    %c365_i32_98 = arith.constant 365 : i32
    %132 = tpu.dynamic_rotate %85 by %c365_i32_98 dim 1 : vector<16x384xf32>, i32 -> vector<16x384xf32>
    %c1_99 = arith.constant 1 : index
    %c8_100 = arith.constant 8 : index
    %c0_101 = arith.constant 0 : index
    %c0_102 = arith.constant 0 : index
    %133 = vector.load %arg2[%c1_99, %c8_100, %c0_101, %c0_102] : memref<3x9x16x1xf32, #tpu.memory_space<vmem>>, vector<1x1x16x1xf32>
    %134 = vector.shape_cast %133 : vector<1x1x16x1xf32> to vector<16x1xf32>
    %135 = vector.broadcast %134 : vector<16x1xf32> to vector<16x384xf32>
    %136 = arith.mulf %132, %135 : vector<16x384xf32>
    %137 = arith.addf %131, %136 : vector<16x384xf32>
    %c1_103 = arith.constant 1 : index
    %c0_104 = arith.constant 0 : index
    %c0_105 = arith.constant 0 : index
    %138 = vector.load %arg3[%c1_103, %c0_104, %c0_105] : memref<3x16x1xf32, #tpu.memory_space<vmem>>, vector<1x16x1xf32>
    %139 = vector.shape_cast %138 : vector<1x16x1xf32> to vector<16x1xf32>
    %140 = vector.broadcast %139 : vector<16x1xf32> to vector<16x384xf32>
    %141 = arith.addf %137, %140 : vector<16x384xf32>
    %cst_106 = arith.constant 0.000000e+00 : f32
    %142 = vector.broadcast %cst_106 : f32 to vector<16x384xf32>
    %143 = arith.maximumf %141, %142 : vector<16x384xf32>
    %144 = vector.broadcast %0 : vector<1x384xf32> to vector<16x384xf32>
    %145 = arith.mulf %143, %144 : vector<16x384xf32>
    %c1_107 = arith.constant 1 : index
    %c0_108 = arith.constant 0 : index
    %c0_109 = arith.constant 0 : index
    %146 = vector.load %arg4[%c1_107, %c0_108, %c0_109] : memref<3x4x16xf32, #tpu.memory_space<vmem>>, vector<1x4x16xf32>
    %147 = vector.shape_cast %146 : vector<1x4x16xf32> to vector<4x16xf32>
    %cst_110 = arith.constant dense<0.000000e+00> : vector<4x384xf32>
    %148 = tpu.matmul %147, %145, %cst_110 {dimension_numbers = #tpu.dot_dimension_numbers<[1], [0], [0], [1], [0, 0, 1, 1], [], []>} : vector<4x16xf32>, vector<16x384xf32>, vector<4x384xf32> -> vector<4x384xf32>
    %c1_111 = arith.constant 1 : index
    %c0_112 = arith.constant 0 : index
    %c0_113 = arith.constant 0 : index
    %149 = vector.load %arg5[%c1_111, %c0_112, %c0_113] : memref<3x4x1xf32, #tpu.memory_space<vmem>>, vector<1x4x1xf32>
    %150 = vector.shape_cast %149 : vector<1x4x1xf32> to vector<4x1xf32>
    %151 = vector.broadcast %150 : vector<4x1xf32> to vector<4x384xf32>
    %152 = arith.addf %148, %151 : vector<4x384xf32>
    %cst_114 = arith.constant 0.000000e+00 : f32
    %153 = vector.broadcast %cst_114 : f32 to vector<4x384xf32>
    %154 = arith.maximumf %152, %153 : vector<4x384xf32>
    %155 = vector.broadcast %0 : vector<1x384xf32> to vector<4x384xf32>
    %156 = arith.mulf %154, %155 : vector<4x384xf32>
    %c0_115 = arith.constant 0 : index
    %c8_116 = arith.constant 8 : index
    %c0_117 = arith.constant 0 : index
    %157 = vector.load %arg7[%c0_115, %c8_116, %c0_117] : memref<1x16x384xf32, #tpu.memory_space<vmem>>, vector<1x4x384xf32>
    %158 = vector.shape_cast %157 : vector<1x4x384xf32> to vector<4x384xf32>
    %159 = vector.shape_cast %156 : vector<4x384xf32> to vector<1x4x384xf32>
    tpu.vector_store %arg7[%c0_115, %c8_116, %c0_117], %159 {strides = array<i32>} : memref<1x16x384xf32, #tpu.memory_space<vmem>>, vector<1x4x384xf32>,
    %c0_118 = arith.constant 0 : index
    %c0_119 = arith.constant 0 : index
    %c0_120 = arith.constant 0 : index
    %160 = vector.load %arg7[%c0_118, %c0_119, %c0_120] : memref<1x16x384xf32, #tpu.memory_space<vmem>>, vector<1x16x384xf32>
    %161 = vector.shape_cast %160 : vector<1x16x384xf32> to vector<16x384xf32>
    %c2_121 = arith.constant 2 : index
    %c4_122 = arith.constant 4 : index
    %c0_123 = arith.constant 0 : index
    %c0_124 = arith.constant 0 : index
    %162 = vector.load %arg2[%c2_121, %c4_122, %c0_123, %c0_124] : memref<3x9x16x1xf32, #tpu.memory_space<vmem>>, vector<1x1x16x1xf32>
    %163 = vector.shape_cast %162 : vector<1x1x16x1xf32> to vector<16x1xf32>
    %164 = vector.broadcast %163 : vector<16x1xf32> to vector<16x384xf32>
    %165 = arith.mulf %161, %164 : vector<16x384xf32>
    %c19_i32_125 = arith.constant 19 : i32
    %166 = tpu.dynamic_rotate %161 by %c19_i32_125 dim 1 : vector<16x384xf32>, i32 -> vector<16x384xf32>
    %c2_126 = arith.constant 2 : index
    %c0_127 = arith.constant 0 : index
    %c0_128 = arith.constant 0 : index
    %c0_129 = arith.constant 0 : index
    %167 = vector.load %arg2[%c2_126, %c0_127, %c0_128, %c0_129] : memref<3x9x16x1xf32, #tpu.memory_space<vmem>>, vector<1x1x16x1xf32>
    %168 = vector.shape_cast %167 : vector<1x1x16x1xf32> to vector<16x1xf32>
    %169 = vector.broadcast %168 : vector<16x1xf32> to vector<16x384xf32>
    %170 = arith.mulf %166, %169 : vector<16x384xf32>
    %171 = arith.addf %165, %170 : vector<16x384xf32>
    %c18_i32_130 = arith.constant 18 : i32
    %172 = tpu.dynamic_rotate %161 by %c18_i32_130 dim 1 : vector<16x384xf32>, i32 -> vector<16x384xf32>
    %c2_131 = arith.constant 2 : index
    %c1_132 = arith.constant 1 : index
    %c0_133 = arith.constant 0 : index
    %c0_134 = arith.constant 0 : index
    %173 = vector.load %arg2[%c2_131, %c1_132, %c0_133, %c0_134] : memref<3x9x16x1xf32, #tpu.memory_space<vmem>>, vector<1x1x16x1xf32>
    %174 = vector.shape_cast %173 : vector<1x1x16x1xf32> to vector<16x1xf32>
    %175 = vector.broadcast %174 : vector<16x1xf32> to vector<16x384xf32>
    %176 = arith.mulf %172, %175 : vector<16x384xf32>
    %177 = arith.addf %171, %176 : vector<16x384xf32>
    %c17_i32_135 = arith.constant 17 : i32
    %178 = tpu.dynamic_rotate %161 by %c17_i32_135 dim 1 : vector<16x384xf32>, i32 -> vector<16x384xf32>
    %c2_136 = arith.constant 2 : index
    %c2_137 = arith.constant 2 : index
    %c0_138 = arith.constant 0 : index
    %c0_139 = arith.constant 0 : index
    %179 = vector.load %arg2[%c2_136, %c2_137, %c0_138, %c0_139] : memref<3x9x16x1xf32, #tpu.memory_space<vmem>>, vector<1x1x16x1xf32>
    %180 = vector.shape_cast %179 : vector<1x1x16x1xf32> to vector<16x1xf32>
    %181 = vector.broadcast %180 : vector<16x1xf32> to vector<16x384xf32>
    %182 = arith.mulf %178, %181 : vector<16x384xf32>
    %183 = arith.addf %177, %182 : vector<16x384xf32>
    %c1_i32_140 = arith.constant 1 : i32
    %184 = tpu.dynamic_rotate %161 by %c1_i32_140 dim 1 : vector<16x384xf32>, i32 -> vector<16x384xf32>
    %c2_141 = arith.constant 2 : index
    %c3_142 = arith.constant 3 : index
    %c0_143 = arith.constant 0 : index
    %c0_144 = arith.constant 0 : index
    %185 = vector.load %arg2[%c2_141, %c3_142, %c0_143, %c0_144] : memref<3x9x16x1xf32, #tpu.memory_space<vmem>>, vector<1x1x16x1xf32>
    %186 = vector.shape_cast %185 : vector<1x1x16x1xf32> to vector<16x1xf32>
    %187 = vector.broadcast %186 : vector<16x1xf32> to vector<16x384xf32>
    %188 = arith.mulf %184, %187 : vector<16x384xf32>
    %189 = arith.addf %183, %188 : vector<16x384xf32>
    %c383_i32_145 = arith.constant 383 : i32
    %190 = tpu.dynamic_rotate %161 by %c383_i32_145 dim 1 : vector<16x384xf32>, i32 -> vector<16x384xf32>
    %c2_146 = arith.constant 2 : index
    %c5_147 = arith.constant 5 : index
    %c0_148 = arith.constant 0 : index
    %c0_149 = arith.constant 0 : index
    %191 = vector.load %arg2[%c2_146, %c5_147, %c0_148, %c0_149] : memref<3x9x16x1xf32, #tpu.memory_space<vmem>>, vector<1x1x16x1xf32>
    %192 = vector.shape_cast %191 : vector<1x1x16x1xf32> to vector<16x1xf32>
    %193 = vector.broadcast %192 : vector<16x1xf32> to vector<16x384xf32>
    %194 = arith.mulf %190, %193 : vector<16x384xf32>
    %195 = arith.addf %189, %194 : vector<16x384xf32>
    %c367_i32_150 = arith.constant 367 : i32
    %196 = tpu.dynamic_rotate %161 by %c367_i32_150 dim 1 : vector<16x384xf32>, i32 -> vector<16x384xf32>
    %c2_151 = arith.constant 2 : index
    %c6_152 = arith.constant 6 : index
    %c0_153 = arith.constant 0 : index
    %c0_154 = arith.constant 0 : index
    %197 = vector.load %arg2[%c2_151, %c6_152, %c0_153, %c0_154] : memref<3x9x16x1xf32, #tpu.memory_space<vmem>>, vector<1x1x16x1xf32>
    %198 = vector.shape_cast %197 : vector<1x1x16x1xf32> to vector<16x1xf32>
    %199 = vector.broadcast %198 : vector<16x1xf32> to vector<16x384xf32>
    %200 = arith.mulf %196, %199 : vector<16x384xf32>
    %201 = arith.addf %195, %200 : vector<16x384xf32>
    %c366_i32_155 = arith.constant 366 : i32
    %202 = tpu.dynamic_rotate %161 by %c366_i32_155 dim 1 : vector<16x384xf32>, i32 -> vector<16x384xf32>
    %c2_156 = arith.constant 2 : index
    %c7_157 = arith.constant 7 : index
    %c0_158 = arith.constant 0 : index
    %c0_159 = arith.constant 0 : index
    %203 = vector.load %arg2[%c2_156, %c7_157, %c0_158, %c0_159] : memref<3x9x16x1xf32, #tpu.memory_space<vmem>>, vector<1x1x16x1xf32>
    %204 = vector.shape_cast %203 : vector<1x1x16x1xf32> to vector<16x1xf32>
    %205 = vector.broadcast %204 : vector<16x1xf32> to vector<16x384xf32>
    %206 = arith.mulf %202, %205 : vector<16x384xf32>
    %207 = arith.addf %201, %206 : vector<16x384xf32>
    %c365_i32_160 = arith.constant 365 : i32
    %208 = tpu.dynamic_rotate %161 by %c365_i32_160 dim 1 : vector<16x384xf32>, i32 -> vector<16x384xf32>
    %c2_161 = arith.constant 2 : index
    %c8_162 = arith.constant 8 : index
    %c0_163 = arith.constant 0 : index
    %c0_164 = arith.constant 0 : index
    %209 = vector.load %arg2[%c2_161, %c8_162, %c0_163, %c0_164] : memref<3x9x16x1xf32, #tpu.memory_space<vmem>>, vector<1x1x16x1xf32>
    %210 = vector.shape_cast %209 : vector<1x1x16x1xf32> to vector<16x1xf32>
    %211 = vector.broadcast %210 : vector<16x1xf32> to vector<16x384xf32>
    %212 = arith.mulf %208, %211 : vector<16x384xf32>
    %213 = arith.addf %207, %212 : vector<16x384xf32>
    %c2_165 = arith.constant 2 : index
    %c0_166 = arith.constant 0 : index
    %c0_167 = arith.constant 0 : index
    %214 = vector.load %arg3[%c2_165, %c0_166, %c0_167] : memref<3x16x1xf32, #tpu.memory_space<vmem>>, vector<1x16x1xf32>
    %215 = vector.shape_cast %214 : vector<1x16x1xf32> to vector<16x1xf32>
    %216 = vector.broadcast %215 : vector<16x1xf32> to vector<16x384xf32>
    %217 = arith.addf %213, %216 : vector<16x384xf32>
    %cst_168 = arith.constant 0.000000e+00 : f32
    %218 = vector.broadcast %cst_168 : f32 to vector<16x384xf32>
    %219 = arith.maximumf %217, %218 : vector<16x384xf32>
    %220 = vector.broadcast %0 : vector<1x384xf32> to vector<16x384xf32>
    %221 = arith.mulf %219, %220 : vector<16x384xf32>
    %c2_169 = arith.constant 2 : index
    %c0_170 = arith.constant 0 : index
    %c0_171 = arith.constant 0 : index
    %222 = vector.load %arg4[%c2_169, %c0_170, %c0_171] : memref<3x4x16xf32, #tpu.memory_space<vmem>>, vector<1x4x16xf32>
    %223 = vector.shape_cast %222 : vector<1x4x16xf32> to vector<4x16xf32>
    %cst_172 = arith.constant dense<0.000000e+00> : vector<4x384xf32>
    %224 = tpu.matmul %223, %221, %cst_172 {dimension_numbers = #tpu.dot_dimension_numbers<[1], [0], [0], [1], [0, 0, 1, 1], [], []>} : vector<4x16xf32>, vector<16x384xf32>, vector<4x384xf32> -> vector<4x384xf32>
    %c2_173 = arith.constant 2 : index
    %c0_174 = arith.constant 0 : index
    %c0_175 = arith.constant 0 : index
    %225 = vector.load %arg5[%c2_173, %c0_174, %c0_175] : memref<3x4x1xf32, #tpu.memory_space<vmem>>, vector<1x4x1xf32>
    %226 = vector.shape_cast %225 : vector<1x4x1xf32> to vector<4x1xf32>
    %227 = vector.broadcast %226 : vector<4x1xf32> to vector<4x384xf32>
    %228 = arith.addf %224, %227 : vector<4x384xf32>
    %cst_176 = arith.constant 0.000000e+00 : f32
    %229 = vector.broadcast %cst_176 : f32 to vector<4x384xf32>
    %230 = arith.maximumf %228, %229 : vector<4x384xf32>
    %231 = vector.broadcast %0 : vector<1x384xf32> to vector<4x384xf32>
    %232 = arith.mulf %230, %231 : vector<4x384xf32>
    %c0_177 = arith.constant 0 : index
    %c12 = arith.constant 12 : index
    %c0_178 = arith.constant 0 : index
    %233 = vector.load %arg7[%c0_177, %c12, %c0_178] : memref<1x16x384xf32, #tpu.memory_space<vmem>>, vector<1x4x384xf32>
    %234 = vector.shape_cast %233 : vector<1x4x384xf32> to vector<4x384xf32>
    %235 = vector.shape_cast %232 : vector<4x384xf32> to vector<1x4x384xf32>
    tpu.vector_store %arg7[%c0_177, %c12, %c0_178], %235 {strides = array<i32>} : memref<1x16x384xf32, #tpu.memory_space<vmem>>, vector<1x4x384xf32>,
    return
  }
  func.func @transform_0(%arg0: i32) -> (i32, i32, i32) {
    %c0_i32 = arith.constant 0 : i32
    %c0_i32_0 = arith.constant 0 : i32
    %c0_i32_1 = arith.constant 0 : i32
    return %arg0, %c0_i32, %c0_i32_0 : i32, i32, i32
  }
  func.func @transform_1(%arg0: i32) -> (i32, i32, i32, i32) {
    %c0_i32 = arith.constant 0 : i32
    %c0_i32_0 = arith.constant 0 : i32
    %c0_i32_1 = arith.constant 0 : i32
    %c0_i32_2 = arith.constant 0 : i32
    %c0_i32_3 = arith.constant 0 : i32
    return %c0_i32, %c0_i32_0, %c0_i32_1, %c0_i32_2 : i32, i32, i32, i32
  }
  func.func @transform_2(%arg0: i32) -> (i32, i32, i32) {
    %c0_i32 = arith.constant 0 : i32
    %c0_i32_0 = arith.constant 0 : i32
    %c0_i32_1 = arith.constant 0 : i32
    %c0_i32_2 = arith.constant 0 : i32
    return %c0_i32, %c0_i32_0, %c0_i32_1 : i32, i32, i32
  }
  func.func @transform_3(%arg0: i32) -> (i32, i32, i32) {
    %c0_i32 = arith.constant 0 : i32
    %c0_i32_0 = arith.constant 0 : i32
    %c0_i32_1 = arith.constant 0 : i32
    %c0_i32_2 = arith.constant 0 : i32
    return %c0_i32, %c0_i32_0, %c0_i32_1 : i32, i32, i32
  }
  func.func @transform_4(%arg0: i32) -> (i32, i32, i32) {
    %c0_i32 = arith.constant 0 : i32
    %c0_i32_0 = arith.constant 0 : i32
    %c0_i32_1 = arith.constant 0 : i32
    %c0_i32_2 = arith.constant 0 : i32
    return %c0_i32, %c0_i32_0, %c0_i32_1 : i32, i32, i32
  }
  func.func @transform_5(%arg0: i32) -> (i32, i32) {
    %c0_i32 = arith.constant 0 : i32
    %c0_i32_0 = arith.constant 0 : i32
    %c0_i32_1 = arith.constant 0 : i32
    return %c0_i32, %c0_i32_0 : i32, i32
  }
  func.func @transform_6(%arg0: i32) -> (i32, i32, i32) {
    %c0_i32 = arith.constant 0 : i32
    %c0_i32_0 = arith.constant 0 : i32
    %c0_i32_1 = arith.constant 0 : i32
    return %arg0, %c0_i32, %c0_i32_0 : i32, i32, i32
  }
}

</mosaic_0001>

<bundles_post_ra>
// kernel: tpu_custom_call.1
= control target key start
LH: loop header
LB: loop body
LE: loop exit
PB: predicated region body
PF: predicated region fallthrough
CT: control target
= control target key end

     0   :  { %11 = vsyncpa [#allocation3], 0  ;;  %s3826_s0 = inlined_call_operand.vmem [shape: f32[2,4,384], index: 0, kind: input, shape index: {}]   ;;  %s3827_s1 = inlined_call_operand.vmem [shape: f32[3,9,16,1], index: 1, kind: input, shape index: {}]   ;;  %s3828_s2 = inlined_call_operand.vmem [shape: f32[3,16,1], index: 2, kind: input, shape index: {}]   ;;  %s3829_s3 = inlined_call_operand.vmem [shape: f32[3,4,16], index: 3, kind: input, shape index: {}]   ;;  %s3830_s4 = inlined_call_operand.vmem [shape: f32[3,4,1], index: 4, kind: input, shape index: {}]   ;;  %s3831_s5 = inlined_call_operand.vmem [shape: f32[1,384], index: 5, kind: input, shape index: {}]   ;;  %s3832_s6 = inlined_call_operand.hbm [shape: f32[2,16,384], index: 6, kind: output, shape index: {}]  }
   0x1   :  { %13 = vsyncpa [#allocation3 + $0x1], 0  ;;  %s2422_s21 = smov 0   ;;  %s2424_s22 = smov 0  }
   0x2   :  { %s2426_s23 = smov 0   ;;  %s2428_s24 = smov 0  }
   0x3 LB: > { %s2443_s25 = sadd.s32 4294967295, %s2371_s24   ;;  %s2068_s26 = sadd.s32 4294967294, %s2371_s24   ;;  %s2371_s24 = sphi %s2428_s24, %s3862_s24   ;;  %s2367_s23 = sphi %s2426_s23, %s3861_s23   ;;  %s2363_s22 = sphi %s2424_s22, %s3860_s22   ;;  %s2359_s21 = sphi %s2422_s21, %s3859_s21  }
   0x4   : > { %s2447_s27 = sadd.s32 1, %s2371_s24   ;;  %s157_s28 = sadd.s32 1, %s2367_s23 }
   0x5   : > { %s154_s29 = ssub.s32 %s2371_s24, %s2447_s27  ;;  %p167_p0 = scmp.ne.s32.totalorder %s2367_s23, %s2363_s22 }
   0x6   : > { %p155_p1 = scmp.eq.s32.totalorder %s154_s29, 0  ;;  %p168_p2 = scmp.eq.s32.totalorder %s2443_s25, 1 }
   0x7   : > { %p173_p3 = scmp.ne.s32.totalorder %s2363_s22, %s2359_s21  ;;  %p174_p4 = scmp.eq.s32.totalorder %s2068_s26, 1 }
   0x8   : > { %s2458_s30 = scalar_select %p155_p1, %s2367_s23, %s157_s28  }
   0x9   : > { %p2460_p5 = por %p168_p2, %p167_p0  ;;  %p2464_p6 = por %p174_p4, %p173_p3 }
   0xa   : > { %p2071_p7 = scmp.ge.s32.totalorder %s2371_s24, 1  ;;  %p215_p8 = scmp.lt.s32.totalorder %s2371_s24, 3 }
   0xc   : > { %p216_p9 = pnand %p2071_p7, %p215_p8 }
   0xd   : > { %s3833_s13 = sand.u32 (!%p216_p9), 1, %s2363_s22   ;;  %p245_p10 = scmp.lt.s32.totalorder (!%p216_p9), %s2443_s25, 1 }
   0xe   : > { %219 = sbr.rel (%p216_p9) target bundleno = 1280 (0x500), region = 44  ;;  %s2375_s17 = smov (!%p216_p9), 19  }
   0xf   : > { %s2172_s14 = smul.u32 (!%p216_p9), 48, %s3833_s13  ;;  %s2376_s18 = smov (!%p216_p9), 18  }
  0x10   : > { %s3846_s11 = smov (!%p216_p9), 17   ;;  %s3840_s15 = smov (!%p216_p9), 1  }
  0x11   : > { %s2488_s19 = scalar_lea.vmem (!%p216_p9), [#allocation2], %s2172_s14  ;;  %s3842_s10 = smov (!%p216_p9), 127  }
  0x12   : > { %s3836_s16 = smov (!%p216_p9), 111   ;;  %s3844_s28 = smov (!%p216_p9), 109  }
  0x13   : > { %v2074_v0 = vld [vmem:[%s3827_s1 + $0x48] sm:$0xff]  ;;  %v2073_v1 = vld [vmem:[%s3827_s1 + $0x40] sm:$0xff]  ;;  %v2373_v2 = vmov 0   ;;  %v3838_v5 = vmov 0.0   ;;  %s246_s20 = scalar_select %p245_p10, %s2443_s25, 1  ;;  %v2076_v6 = vld [vmem:[%s3827_s1 + $0x18] sm:$0xff] }
  0x14   : > { %2228 = vset.pattern.permute.xlu1 %v2373_v2  ;;  %2227 = vset.pattern.permute.xlu0 %v2373_v2  ;;  %v312_v3 = vld [vmem:[%s3827_s1 + $0x8] sm:$0xff]  ;;  %v311_v4 = vld [vmem:[%s3827_s1] sm:$0xff]  ;;  %254 = vst [vmem:[%s2488_s19 + $0x18] sm:$0xff] %v3838_v5  ;;  %255 = vst [vmem:[%s2488_s19 + $0x20] sm:$0xff] %v3838_v5  ;;  %vm2383_vm0 = vmmov 0   ;;  %vm696_vm9 = vcmask 130048  }
  0x15   : > { %281 = vperm.xlu0 %2227, %v2074_v0   ;;  %276 = vperm.xlu1 %2228, %v2073_v1   ;;  %251 = vst [vmem:[%s2488_s19] sm:$0xff] %v3838_v5  ;;  %252 = vst [vmem:[%s2488_s19 + $0x8] sm:$0xff] %v3838_v5  ;;  %s2173_s26 = smul.u32 12, %s246_s20  ;;  %v2078_v7 = vld [vmem:[%s3827_s1 + $0x28] sm:$0xff]  ;;  %v2075_v11 = vld [vmem:[%s3827_s1 + $0x10] sm:$0xff]  ;;  %s3855_s20 = smov 127  }
  0x16   : > { %2151 = vmatprep.subr.mxu1 %v3838_v5  ;;  %764 = vmatprep.mubr.f32.mxu0 %v3838_v5  ;;  %253 = vst [vmem:[%s2488_s19 + $0x10] sm:$0xff] %v3838_v5  ;;  %256 = vst [vmem:[%s2488_s19 + $0x28] sm:$0xff] %v3838_v5  ;;  %v2077_v14 = vld [vmem:[%s3827_s1 + $0x20] sm:$0xff]  ;;  %v2080_v15 = vld [vmem:[%s3827_s1 + $0x38] sm:$0xff]  ;;  %s3856_s29 = smov 1   ;;  %s3857_s13 = smov 109  }
  0x17   : > { %s249_s14 = scalar_lea.vmem %s3826_s0, %s2173_s26  ;;  %v2079_v17 = vld [vmem:[%s3827_s1 + $0x30] sm:$0xff]  ;;  %v2082_v18 = vld [vmem:[%s3827_s1 + $0x58] sm:$0xff]  ;;  %v2084_v20 = vld [vmem:[%s3827_s1 + $0x68] sm:$0xff]  ;;  %2155 = vmatprep.mubr.msk.f32.mxu1 %vm2383_vm0, %v3838_v5  ;;  %s3851_s26 = smov 110  }
  0x18   : > { %v257_v8 = vld [vmem:[%s249_s14] sm:$0xff]  ;;  %v258_v9 = vld [vmem:[%s249_s14 + $0x8] sm:$0xf]  ;;  %v2081_v19 = vld [vmem:[%s3827_s1 + $0x50] sm:$0xff]  ;;  %s3834_s14 = smov 110  }
  0x19   : > { %320 = vperm.xlu0 %2227, %v312_v3   ;;  %315 = vperm.xlu1 %2228, %v311_v4   ;;  %v260_v10 = vcombine.high %v257_v8, %v257_v8  ;;  %262 = vst [vmem:[%s2488_s19] sm:$0xf] %v257_v8  ;;  %264 = vst [vmem:[%s2488_s19 + $0x10] sm:$0xf] %v258_v9  ;;  %v2083_v21 = vld [vmem:[%s3827_s1 + $0x60] sm:$0xff]  ;;  %v2086_v22 = vld [vmem:[%s3827_s1 + $0x78] sm:$0xff] }
  0x1a   : > { %v2085_v23 = vld [vmem:[%s3827_s1 + $0x70] sm:$0xff]  ;;  %v2088_v24 = vld [vmem:[%s3827_s1 + $0x88] sm:$0xff]  ;;  %v2087_v25 = vld [vmem:[%s3827_s1 + $0x80] sm:$0xff] }
  0x1b   : > { %263 = vst [vmem:[%s2488_s19 + $0x8] sm:$0xf] %v260_v10  ;;  %v644_v26 = vld [vmem:[%s3828_s2 + $0x8] sm:$0xff]  ;;  %v643_v27 = vld [vmem:[%s3828_s2] sm:$0xff]  ;;  %v2092_v29 = vld [vmem:[%s3827_s1 + $0xd8] sm:$0xff] }
  0x1c   : > { %v690_v28 = vld [vmem:[%s3830_s4] sm:$0xf]  ;;  %v2094_v30 = vld [vmem:[%s3827_s1 + $0x98] sm:$0xff]  ;;  %v2091_v31 = vld [vmem:[%s3827_s1 + $0xd0] sm:$0xff] }
  0x1d   : > { %364 = vperm.xlu0 %2227, %v2076_v6   ;;  %408 = vperm.xlu1 %2228, %v2078_v7   ;;  %v2093_v34 = vld [vmem:[%s3827_s1 + $0x90] sm:$0xff]  ;;  %v2096_v35 = vld [vmem:[%s3827_s1 + $0xa8] sm:$0xff]  ;;  %v2095_v38 = vld [vmem:[%s3827_s1 + $0xa0] sm:$0xff] }
  0x1e   : > { %v2098_v41 = vld [vmem:[%s3827_s1 + $0xb8] sm:$0xff]  ;;  %v2097_v44 = vld [vmem:[%s3827_s1 + $0xb0] sm:$0xff]  ;;  %v2100_v47 = vld [vmem:[%s3827_s1 + $0xc8] sm:$0xff] }
  0x1f   : > { %v2102_v50 = vld [vmem:[%s3827_s1 + $0xe8] sm:$0xff]  ;;  %v2099_v53 = vld [vmem:[%s3827_s1 + $0xc0] sm:$0xff]  ;;  %v2104_v59 = vld [vmem:[%s3827_s1 + $0xf8] sm:$0xff] }
  0x20   : > { %v2521_v12 = vld [vmem:[%s2488_s19] sm:$0xff]  ;;  %v2541_v16 = vld [vmem:[%s2488_s19 + $0x10] sm:$0xff]  ;;  %v2106_v62 = vld [vmem:[%s3827_s1 + $0x108] sm:$0xff] }
  0x21   : > { %359 = vperm.xlu0 %2227, %v2075_v11   ;;  %2230 = vrot.lane.b32.xlu1 %v3838_v5, %s2375_s17  ;;  %v2101_v56 = vld [vmem:[%s3827_s1 + $0xe0] sm:$0xff]  ;;  %v2103_v1 = vld [vmem:[%s3827_s1 + $0xf0] sm:$0xff]  ;;  %v2108_v8 = vld [vmem:[%s3827_s1 + $0x118] sm:$0xff] }
  0x22   : > { %v2528_v13 = vld [vmem:[%s2488_s19 + $0x8] sm:$0xff]  ;;  %v2105_v4 = vld [vmem:[%s3827_s1 + $0x100] sm:$0xff] }
  0x25   : > { %300 = vrot.lane.b32.xlu0 %v3838_v5, %s2375_s17  ;;  %290 = vrot.lane.b32.xlu1 %v2521_v12, %s2375_s17 }
  0x29   : > { %294 = vrot.lane.b32.xlu0 %v2528_v13, %s2375_s17  ;;  %2235 = vrot.lane.b32.xlu1 %v3838_v5, %s2376_s18 }
  0x2d   : > { %403 = vperm.xlu0 %2227, %v2077_v14   ;;  %452 = vperm.xlu1 %2228, %v2080_v15   ;;  %v2107_v15 = vld [vmem:[%s3827_s1 + $0x110] sm:$0xff] }
  0x31   : > { %298 = vrot.lane.b32.xlu0 %v2541_v16, %s2375_s17  ;;  %345 = vrot.lane.b32.xlu1 %v3838_v5, %s2376_s18 }
  0x35   : > { %335 = vrot.lane.b32.xlu0 %v2521_v12, %s2376_s18  ;;  %339 = vrot.lane.b32.xlu1 %v2528_v13, %s2376_s18 }
  0x39   : > { %2240 = vrot.lane.b32.xlu0 %v3838_v5, %s3846_s11  ;;  %447 = vperm.xlu1 %2228, %v2079_v17  }
  0x3d   : > { %496 = vperm.xlu0 %2227, %v2082_v18   ;;  %343 = vrot.lane.b32.xlu1 %v2541_v16, %s2376_s18 }
  0x41   : > { %389 = vrot.lane.b32.xlu0 %v3838_v5, %s3846_s11  ;;  %379 = vrot.lane.b32.xlu1 %v2521_v12, %s3846_s11 }
  0x45   : > { %383 = vrot.lane.b32.xlu0 %v2528_v13, %s3846_s11  ;;  %2245 = vrot.lane.b32.xlu1 %v3838_v5, %s3840_s15 }
  0x49   : > { %491 = vperm.xlu0 %2227, %v2081_v19   ;;  %540 = vperm.xlu1 %2228, %v2084_v20   ;;  %v302_v19 = vlaneseq }
  0x4d   : > { %387 = vrot.lane.b32.xlu0 %v2541_v16, %s3846_s11  ;;  %433 = vrot.lane.b32.xlu1 %v3838_v5, %s3840_s15 }
  0x51   : > { %423 = vrot.lane.b32.xlu0 %v2521_v12, %s3840_s15  ;;  %427 = vrot.lane.b32.xlu1 %v2528_v13, %s3840_s15 }
  0x55   : > { %2250 = vrot.lane.b32.xlu0 %v3838_v5, %s3842_s10  ;;  %535 = vperm.xlu1 %2228, %v2083_v21  }
  0x59   : > { %584 = vperm.xlu0 %2227, %v2086_v22   ;;  %431 = vrot.lane.b32.xlu1 %v2541_v16, %s3840_s15  ;;  %v2803_v22 = vand.u32 127, %v302_v19 }
  0x5b   : > { %vm304_vm1 = vcmp.lt.s32.totalorder %v2803_v22, 19  ;;  %vm347_vm2 = vcmp.lt.s32.totalorder %v2803_v22, 18  ;;  %vm391_vm3 = vcmp.lt.s32.totalorder %v2803_v22, 17  ;;  %vm435_vm4 = vcmp.lt.s32.totalorder %v2803_v22, 1 }
  0x5c   : > { %vm479_vm5 = vcmp.lt.s32.totalorder %v2803_v22, 127  ;;  %vm523_vm6 = vcmp.lt.s32.totalorder %v2803_v22, 111  ;;  %vm567_vm7 = vcmp.lt.s32.totalorder %v2803_v22, 110  ;;  %vm611_vm8 = vcmp.lt.s32.totalorder %v2803_v22, 109 }
  0x5d   : > { %469 = vrot.lane.b32.xlu0 %v3838_v5, %s3842_s10  ;;  %471 = vrot.lane.b32.xlu1 %v2528_v13, %s3842_s10 }
  0x61   : > { %475 = vrot.lane.b32.xlu0 %v2541_v16, %s3842_s10  ;;  %2255 = vrot.lane.b32.xlu1 %v3838_v5, %s3836_s16 }
  0x65   : > { %579 = vperm.xlu0 %2227, %v2085_v23   ;;  %628 = vperm.xlu1 %2228, %v2088_v24   ;;  %v2110_v23 = vld [vmem:[%s3828_s2 + $0x18] sm:$0xff] }
  0x69   : > { %467 = vrot.lane.b32.xlu0 %v2521_v12, %s3842_s10  ;;  %513 = vrot.lane.b32.xlu1 %v3838_v5, %s3836_s16 }
  0x6d   : > { %515 = vrot.lane.b32.xlu0 %v2528_v13, %s3836_s16  ;;  %519 = vrot.lane.b32.xlu1 %v2541_v16, %s3836_s16 }
  0x71   : > { %2260 = vrot.lane.b32.xlu0 %v3838_v5, %s3834_s14  ;;  %623 = vperm.xlu1 %2228, %v2087_v25  }
  0x75   : > { %511 = vrot.lane.b32.xlu0 %v2521_v12, %s3836_s16  ;;  %557 = vrot.lane.b32.xlu1 %v3838_v5, %s3834_s14  ;;  %s3850_s16 = smov 111  }
  0x79   : > { %559 = vrot.lane.b32.xlu0 %v2528_v13, %s3834_s14  ;;  %563 = vrot.lane.b32.xlu1 %v2541_v16, %s3834_s14 }
  0x7d   : > { %2265 = vrot.lane.b32.xlu0 %v3838_v5, %s3844_s28  ;;  %652 = vperm.xlu1 %2228, %v644_v26   ;;  %v2812_v26 = vshrl.u32 %v302_v19, 7 }
  0x81   : > { %555 = vrot.lane.b32.xlu0 %v2521_v12, %s3834_s14  ;;  %601 = vrot.lane.b32.xlu1 %v3838_v5, %s3844_s28 }
  0x85   : > { %603 = vrot.lane.b32.xlu0 %v2528_v13, %s3844_s28  ;;  %607 = vrot.lane.b32.xlu1 %v2541_v16, %s3844_s28 }
  0x89   : > { %647 = vperm.xlu0 %2227, %v643_v27   ;;  %599 = vrot.lane.b32.xlu1 %v2521_v12, %s3844_s28 }
  0x8d   : > { %693 = vperm.xlu0 %2227, %v690_v28   ;;  %875 = vperm.xlu1 %2228, %v2092_v29  }
  0x90   : > { %v2660_v32 = vpop.permute.xlu0 %281  ;;  %v2662_v33 = vpop.permute.xlu1 %276 }
  0x91   : > { %912 = vperm.xlu0 %2227, %v2094_v30   ;;  %870 = vperm.xlu1 %2228, %v2091_v31   ;;  %v674_v31 = vsub.s32 1, %v2812_v26 }
  0x94   : > { %v2670_v36 = vpop.permute.xlu0 %320  ;;  %v2672_v37 = vpop.permute.xlu1 %315 }
  0x95   : > { %907 = vperm.xlu0 %2227, %v2093_v34   ;;  %955 = vperm.xlu1 %2228, %v2096_v35   ;;  %v2829_v35 = vld [vmem:[%s3831_s5] sm:$0x7] }
  0x98   : > { %v2677_v39 = vpop.permute.xlu0 %364  ;;  %v2679_v40 = vpop.permute.xlu1 %408 }
  0x99   : > { %2270 = vrot.lane.b32.xlu0 %v3838_v5, %s2375_s17  ;;  %950 = vperm.xlu1 %2228, %v2095_v38   ;;  %v670_v38 = vsub.s32 0, %v2812_v26 }
  0x9c   : > { %v2686_v42 = vpop.permute.xlu0 %359  ;;  %v2688_v43 = vpop.permute.xlu1 %2230 }
  0x9d   : > { %998 = vperm.xlu0 %2227, %v2098_v41   ;;  %894 = vrot.lane.b32.xlu1 %v3838_v5, %s2375_s17  ;;  %v2233_v27 = vunpack.i.h.bf16 %v2688_v43  ;;  %v2232_v28 = vunpack.i.l.bf16 %v2688_v43 }
  0x9f   : > { %v308_v34 = vsel %vm304_vm1, %v2232_v28, %v2233_v27 }
  0xa0   : > { %v2695_v45 = vpop.permute.xlu0 %300  ;;  %v2697_v46 = vpop.permute.xlu1 %290 }
  0xa1   : > { %2275 = vrot.lane.b32.xlu0 %v3838_v5, %s2376_s18  ;;  %993 = vperm.xlu1 %2228, %v2097_v44   ;;  %v310_v41 = vsel %vm304_vm1, %v2695_v45, %v2232_v28  ;;  %v286_v28 = vmul.f32 %v2662_v33, %v2541_v16 }
  0xa4   : > { %v2704_v48 = vpop.permute.xlu0 %294  ;;  %v2706_v49 = vpop.permute.xlu1 %2235 }
  0xa5   : > { %1041 = vperm.xlu0 %2227, %v2100_v47   ;;  %2280 = vrot.lane.b32.xlu1 %v3838_v5, %s3846_s11  ;;  %v2238_v43 = vunpack.i.h.bf16 %v2706_v49  ;;  %v2237_v44 = vunpack.i.l.bf16 %v2706_v49  ;;  %v327_v47 = vmul.f32 %v2670_v36, %v308_v34  ;;  %v2853_v49 = vrot.slane %v2829_v35, %v670_v38 }
  0xa8   : > { %v2713_v51 = vpop.permute.xlu0 %403  ;;  %v2715_v52 = vpop.permute.xlu1 %452 }
  0xa9   : > { %937 = vrot.lane.b32.xlu0 %v3838_v5, %s2376_s18  ;;  %1084 = vperm.xlu1 %2228, %v2102_v50  }
  0xac   : > { %v2722_v54 = vpop.permute.xlu0 %298  ;;  %v2724_v55 = vpop.permute.xlu1 %345 }
  0xad   : > { %1036 = vperm.xlu0 %2227, %v2099_v53   ;;  %980 = vrot.lane.b32.xlu1 %v3838_v5, %s3846_s11  ;;  %v305_v19 = vsel %vm304_vm1, %v2704_v48, %v2722_v54 }
  0xae   : > { %v325_v16 = vmul.f32 %v2672_v37, %v305_v19 }
  0xb0   : > { %v2731_v57 = vpop.permute.xlu0 %335  ;;  %v2733_v58 = vpop.permute.xlu1 %339 }
  0xb1   : > { %2285 = vrot.lane.b32.xlu0 %v3838_v5, %s3840_s15  ;;  %1079 = vperm.xlu1 %2228, %v2101_v56   ;;  %v2845_v56 = vrot.slane %v2829_v35, %v674_v31 }
  0xb4   : > { %v2740_v60 = vpop.permute.xlu0 %2240  ;;  %v2742_v61 = vpop.permute.xlu1 %447 }
  0xb5   : > { %1127 = vperm.xlu0 %2227, %v2104_v59   ;;  %2290 = vrot.lane.b32.xlu1 %v3838_v5, %s3842_s10  ;;  %v306_v59 = vsel %vm304_vm1, %v2233_v27, %v2695_v45  ;;  %v351_v45 = vsel %vm347_vm2, %v2237_v44, %v2238_v43  ;;  %v285_v27 = vmul.f32 %v2662_v33, %v2528_v13 }
  0xb6   : > { %v328_v34 = vmul.f32 %v2670_v36, %v306_v59 }
  0xb8   : > { %v2749_v63 = vpop.permute.xlu0 %496  ;;  %v2751_v0 = vpop.permute.xlu1 %343 }
  0xb9   : > { %1023 = vrot.lane.b32.xlu0 %v3838_v5, %s3840_s15  ;;  %1170 = vperm.xlu1 %2228, %v2106_v62   ;;  %v326_v62 = vmul.f32 %v2670_v36, %v310_v41  ;;  %v350_v36 = vsel %vm347_vm2, %v2731_v57, %v2733_v58 }
  0xbc   : > { %v2758_v2 = vpop.permute.xlu0 %389  ;;  %v2760_v3 = vpop.permute.xlu1 %379 }
  0xbd   : > { %1122 = vperm.xlu0 %2227, %v2103_v1   ;;  %1058 = vrot.lane.b32.xlu1 %v3838_v5, %s3842_s10 }
  0xc0   : > { %v2767_v6 = vpop.permute.xlu0 %383  ;;  %v2769_v7 = vpop.permute.xlu1 %2245 }
  0xc1   : > { %2295 = vrot.lane.b32.xlu0 %v3838_v5, %s3850_s16  ;;  %1165 = vperm.xlu1 %2228, %v2105_v4   ;;  %v287_v4 = vmul.f32 0.0, %v2660_v32  ;;  %v309_v32 = vsel %vm304_vm1, %v2722_v54, %v2697_v46  ;;  %v371_v54 = vmul.f32 %v2677_v39, %v351_v45 }
  0xc2   : > { %v323_v13 = vmul.f32 %v2672_v37, %v309_v32  ;;  %v368_v32 = vmul.f32 %v2686_v42, %v350_v36  ;;  %v331_v36 = vadd.f32 %v325_v16, %v286_v28 }
  0xc3   : > { %v333_v31 = vadd.f32 %v327_v47, %v287_v4  ;;  %v332_v41 = vadd.f32 %v326_v62, %v287_v4  ;;  %v2248_v62 = vunpack.i.h.bf16 %v2769_v7 }
  0xc4   : > { %v2776_v9 = vpop.permute.xlu0 %491  ;;  %v2778_v10 = vpop.permute.xlu1 %540 }
  0xc5   : > { %1213 = vperm.xlu0 %2227, %v2108_v8   ;;  %2300 = vrot.lane.b32.xlu1 %v3838_v5, %s3851_s26  ;;  %v284_v8 = vmul.f32 %v2662_v33, %v2521_v12  ;;  %v2243_v12 = vunpack.i.h.bf16 %v2740_v60  ;;  %v349_v33 = vsel %vm347_vm2, %v2238_v43, %v2724_v55  ;;  %v334_v43 = vadd.f32 %v328_v34, %v287_v4 }
  0xc8   : > { %v2782_v11 = vpop.permute.xlu0 %387  ;;  %v2784_v14 = vpop.permute.xlu1 %433 }
  0xc9   : > { %1101 = vrot.lane.b32.xlu0 %v3838_v5, %s3850_s16  ;;  %2305 = vrot.lane.b32.xlu1 %v3838_v5, %s3844_s28 }
  0xcc   : > { %v2793_v17 = vpop.permute.xlu0 %423  ;;  %v2795_v18 = vpop.permute.xlu1 %427 }
  0xcd   : > { %1208 = vperm.xlu0 %2227, %v2107_v15   ;;  %v307_v15 = vsel %vm304_vm1, %v2697_v46, %v2704_v48 }
  0xce   : > { %v324_v46 = vmul.f32 %v2672_v37, %v307_v15  ;;  %v352_v37 = vsel %vm347_vm2, %v2751_v0, %v2731_v57  ;;  %v2247_v15 = vunpack.i.l.bf16 %v2769_v7  ;;  %v393_v57 = vsel %vm391_vm3, %v2243_v12, %v2758_v2 }
  0xcf   : > { %v367_v7 = vmul.f32 %v2686_v42, %v352_v37 }
  0xd0   : > { %v2797_v20 = vpop.permute.xlu0 %2250  ;;  %v2799_v21 = vpop.permute.xlu1 %535 }
  0xd1   : > { %1144 = vrot.lane.b32.xlu0 %v3838_v5, %s3851_s26 }
  0xd4   : > { %v2808_v24 = vpop.permute.xlu0 %584  ;;  %v2810_v25 = vpop.permute.xlu1 %431 }
  0xd5   : > { %1238 = vperm.xlu0 %2227, %v2110_v23   ;;  %v2242_v23 = vunpack.i.l.bf16 %v2740_v60  ;;  %v353_v60 = vsel %vm347_vm2, %v2724_v55, %v2237_v44  ;;  %v348_v44 = vsel %vm347_vm2, %v2733_v58, %v2751_v0  ;;  %v372_v58 = vmul.f32 %v2677_v39, %v349_v33 }
  0xd6   : > { %v370_v59 = vmul.f32 %v2677_v39, %v353_v60  ;;  %v394_v0 = vsel %vm391_vm3, %v2760_v3, %v2767_v6  ;;  %v330_v39 = vadd.f32 %v324_v46, %v285_v27  ;;  %v377_v60 = vadd.f32 %v371_v54, %v333_v31 }
  0xd7   : > { %v395_v47 = vsel %vm391_vm3, %v2242_v23, %v2243_v12  ;;  %v397_v55 = vsel %vm391_vm3, %v2758_v2, %v2242_v23  ;;  %v369_v23 = vmul.f32 %v2686_v42, %v348_v44  ;;  %v329_v33 = vadd.f32 %v323_v13, %v284_v8 }
  0xd8   : > { %v2817_v29 = vpop.permute.xlu0 %469  ;;  %v2819_v30 = vpop.permute.xlu1 %471  ;;  %v415_v4 = vmul.f32 %v2679_v40, %v395_v47  ;;  %v414_v34 = vmul.f32 %v2679_v40, %v397_v55  ;;  %v376_v2 = vadd.f32 %v370_v59, %v332_v41  ;;  %v416_v12 = vmul.f32 %v2679_v40, %v393_v57 }
  0xd9   : > { %1187 = vrot.lane.b32.xlu0 %v3838_v5, %s3844_s28  ;;  %v412_v5 = vmul.f32 %v2713_v51, %v394_v0  ;;  %v439_v47 = vsel %vm435_vm4, %v2247_v15, %v2248_v62  ;;  %v378_v42 = vadd.f32 %v372_v58, %v334_v43  ;;  %v374_v44 = vadd.f32 %v368_v32, %v330_v39 }
  0xda   : > { %v2253_v55 = vunpack.i.h.bf16 %v2797_v20  ;;  %v2252_v27 = vunpack.i.l.bf16 %v2797_v20  ;;  %v421_v8 = vadd.f32 %v415_v4, %v377_v60  ;;  %v373_v28 = vadd.f32 %v367_v7, %v329_v33 }
  0xdb   : > { %v375_v31 = vadd.f32 %v369_v23, %v331_v36  ;;  %v420_v41 = vadd.f32 %v414_v34, %v376_v2  ;;  %v459_v40 = vmul.f32 %v2715_v52, %v439_v47  ;;  %v392_v46 = vsel %vm391_vm3, %v2767_v6, %v2782_v11 }
  0xdc   : > { %v2840_v50 = vpop.permute.xlu0 %475  ;;  %v2842_v53 = vpop.permute.xlu1 %2255  ;;  %v396_v54 = vsel %vm391_vm3, %v2782_v11, %v2760_v3  ;;  %v441_v20 = vsel %vm435_vm4, %v2784_v14, %v2247_v15  ;;  %v422_v13 = vadd.f32 %v416_v12, %v378_v42  ;;  %v418_v16 = vadd.f32 %v412_v5, %v374_v44 }
  0xdd   : > { %v437_v43 = vsel %vm435_vm4, %v2248_v62, %v2784_v14  ;;  %v438_v6 = vsel %vm435_vm4, %v2793_v17, %v2795_v18  ;;  %v481_v3 = vsel %vm479_vm5, %v2252_v27, %v2253_v55  ;;  %v440_v5 = vsel %vm435_vm4, %v2810_v25, %v2793_v17 }
  0xde   : > { %v2258_v11 = vunpack.i.h.bf16 %v2842_v53  ;;  %v2257_v14 = vunpack.i.l.bf16 %v2842_v53  ;;  %v411_v62 = vmul.f32 %v2713_v51, %v396_v54  ;;  %v413_v15 = vmul.f32 %v2713_v51, %v392_v46 }
  0xdf   : > { %v458_v32 = vmul.f32 %v2715_v52, %v441_v20  ;;  %v436_v57 = vsel %vm435_vm4, %v2795_v18, %v2810_v25  ;;  %v465_v0 = vadd.f32 %v459_v40, %v421_v8  ;;  %v460_v4 = vmul.f32 %v2715_v52, %v437_v43 }
  0xe0   : > { %v2880_v38 = vpop.permute.xlu0 %579  ;;  %v2882_v48 = vpop.permute.xlu1 %628  ;;  %v456_v17 = vmul.f32 %v2742_v61, %v438_v6  ;;  %v483_v53 = vsel %vm479_vm5, %v2817_v29, %v2252_v27  ;;  %v503_v7 = vmul.f32 %v2749_v63, %v481_v3  ;;  %v455_v51 = vmul.f32 %v2742_v61, %v440_v5 }
  0xe1   : > { %v485_v23 = vsel %vm479_vm5, %v2253_v55, %v2817_v29  ;;  %v480_v18 = vsel %vm479_vm5, %v2819_v30, %v2840_v50  ;;  %v457_v34 = vmul.f32 %v2742_v61, %v436_v57  ;;  %v525_v39 = vsel %vm523_vm6, %v2257_v14, %v2258_v11 }
  0xe2   : > { %v417_v36 = vadd.f32 %v411_v62, %v373_v28  ;;  %v419_v2 = vadd.f32 %v413_v15, %v375_v31  ;;  %v464_v12 = vadd.f32 %v458_v32, %v420_v41  ;;  %v502_v29 = vmul.f32 %v2749_v63, %v483_v53 }
  0xe3   : > { %v504_v47 = vmul.f32 %v2749_v63, %v485_v23  ;;  %v500_v42 = vmul.f32 %v2776_v9, %v480_v18  ;;  %v466_v55 = vadd.f32 %v460_v4, %v422_v13  ;;  %v462_v27 = vadd.f32 %v456_v17, %v418_v16 }
  0xe4   : > { %v2915_v45 = vpop.permute.xlu0 %467  ;;  %v2917_v19 = vpop.permute.xlu1 %513  ;;  %v547_v8 = vmul.f32 %v2778_v10, %v525_v39  ;;  %v509_v41 = vadd.f32 %v503_v7, %v465_v0  ;;  %v461_v40 = vadd.f32 %v455_v51, %v417_v36  ;;  %v463_v46 = vadd.f32 %v457_v34, %v419_v2 }
  0xe5   : > { %v527_v44 = vsel %vm523_vm6, %v2917_v19, %v2257_v14  ;;  %v529_v61 = vsel %vm523_vm6, %v2258_v11, %v2917_v19  ;;  %v508_v20 = vadd.f32 %v502_v29, %v464_v12  ;;  %v510_v16 = vadd.f32 %v504_v47, %v466_v55 }
  0xe6   : > { %v546_v43 = vmul.f32 %v2778_v10, %v527_v44  ;;  %v548_v19 = vmul.f32 %v2778_v10, %v529_v61  ;;  %v506_v6 = vadd.f32 %v500_v42, %v462_v27  ;;  %v484_v3 = vsel %vm479_vm5, %v2840_v50, %v2915_v45 }
  0xe7   : > { %v553_v62 = vadd.f32 %v547_v8, %v509_v41  ;;  %v501_v0 = vmul.f32 %v2776_v9, %v484_v3 }
  0xe8   : > { %v2937_v1 = vpop.permute.xlu0 %515  ;;  %v2939_v37 = vpop.permute.xlu1 %519  ;;  %v552_v4 = vadd.f32 %v546_v43, %v508_v20  ;;  %v554_v17 = vadd.f32 %v548_v19, %v510_v16 }
  0xe9   : > { %v524_v10 = vsel %vm523_vm6, %v2937_v1, %v2939_v37  ;;  %v507_v47 = vadd.f32 %v501_v0, %v463_v46 }
  0xea   : > { %v544_v53 = vmul.f32 %v2799_v21, %v524_v10 }
  0xec   : > { %v2261_v59 = vpop.permute.xlu0 %2260  ;;  %v2963_v58 = vpop.permute.xlu1 %623  ;;  %v550_v61 = vadd.f32 %v544_v53, %v506_v6 }
  0xed   : > { %v2263_v60 = vunpack.i.h.bf16 %v2261_v59  ;;  %v2262_v33 = vunpack.i.l.bf16 %v2261_v59  ;;  %v482_v59 = vsel %vm479_vm5, %v2915_v45, %v2819_v30 }
  0xee   : > { %v499_v45 = vmul.f32 %v2776_v9, %v482_v59 }
  0xef   : > { %v569_v63 = vsel %vm567_vm7, %v2262_v33, %v2263_v60 }
  0xf0   : > { %v512_v52 = vpop.permute.xlu0 %511  ;;  %v558_v25 = vpop.permute.xlu1 %557  ;;  %v591_v15 = vmul.f32 %v2808_v24, %v569_v63  ;;  %v505_v29 = vadd.f32 %v499_v45, %v461_v40 }
  0xf1   : > { %v571_v54 = vsel %vm567_vm7, %v558_v25, %v2262_v33  ;;  %v573_v13 = vsel %vm567_vm7, %v2263_v60, %v558_v25  ;;  %v526_v30 = vsel %vm523_vm6, %v512_v52, %v2937_v1  ;;  %v528_v7 = vsel %vm523_vm6, %v2939_v37, %v512_v52 }
  0xf2   : > { %v590_v5 = vmul.f32 %v2808_v24, %v571_v54  ;;  %v592_v32 = vmul.f32 %v2808_v24, %v573_v13  ;;  %v543_v1 = vmul.f32 %v2799_v21, %v526_v30  ;;  %v597_v9 = vadd.f32 %v591_v15, %v553_v62 }
  0xf3   : > { %v545_v42 = vmul.f32 %v2799_v21, %v528_v7  ;;  %v3852_v13 = vsub.s32 2, %v2812_v26  ;;  %v3853_v7 = vmov 0.0  }
  0xf4   : > { %v560_v28 = vpop.permute.xlu0 %559  ;;  %v564_v31 = vpop.permute.xlu1 %563  ;;  %v596_v23 = vadd.f32 %v590_v5, %v552_v4  ;;  %v598_v39 = vadd.f32 %v592_v32, %v554_v17  ;;  %v549_v63 = vadd.f32 %v543_v1, %v505_v29 }
  0xf5   : > { %v568_v51 = vsel %vm567_vm7, %v560_v28, %v564_v31  ;;  %v551_v43 = vadd.f32 %v545_v42, %v507_v47  ;;  %v3066_v16 = vrot.slane %v2829_v35, %v3852_v13 }
  0xf6   : > { %v588_v33 = vmul.f32 %v2880_v38, %v568_v51 }
  0xf8   : > { %v2266_v11 = vpop.permute.xlu0 %2265  ;;  %v653_v14 = vpop.permute.xlu1 %652 }
  0xf9   : > { %v2268_v57 = vunpack.i.h.bf16 %v2266_v11  ;;  %v2267_v50 = vunpack.i.l.bf16 %v2266_v11 }
  0xfb   : > { %v613_v24 = vsel %vm611_vm8, %v2267_v50, %v2268_v57 }
  0xfc   : > { %v556_v18 = vpop.permute.xlu0 %555  ;;  %v602_v25 = vpop.permute.xlu1 %601  ;;  %v635_v34 = vmul.f32 %v2882_v48, %v613_v24 }
  0xfd   : > { %v570_v60 = vsel %vm567_vm7, %v556_v18, %v560_v28  ;;  %v615_v37 = vsel %vm611_vm8, %v602_v25, %v2267_v50  ;;  %v617_v52 = vsel %vm611_vm8, %v2268_v57, %v602_v25  ;;  %v572_v36 = vsel %vm567_vm7, %v564_v31, %v556_v18 }
  0xfe   : > { %v634_v2 = vmul.f32 %v2882_v48, %v615_v37  ;;  %v636_v12 = vmul.f32 %v2882_v48, %v617_v52  ;;  %v641_v44 = vadd.f32 %v635_v34, %v597_v9  ;;  %v587_v55 = vmul.f32 %v2880_v38, %v570_v60  ;;  %v689_v34 = vld [vmem:[%s3829_s3] sm:$0xf] }
  0xff   : > { %v589_v54 = vmul.f32 %v2880_v38, %v572_v36  ;;  %v594_v48 = vadd.f32 %v588_v33, %v550_v61 }
 0x100   : > { %v604_v27 = vpop.permute.xlu0 %603  ;;  %v608_v8 = vpop.permute.xlu1 %607  ;;  %v640_v28 = vadd.f32 %v634_v2, %v596_v23  ;;  %v642_v41 = vadd.f32 %v636_v12, %v598_v39  ;;  %v659_v20 = vadd.f32 %v653_v14, %v641_v44  ;;  %v593_v6 = vadd.f32 %v587_v55, %v549_v63 }
 0x101   : > { %v612_v31 = vsel %vm611_vm8, %v604_v27, %v608_v8  ;;  %v595_v11 = vadd.f32 %v589_v54, %v551_v43 }
 0x102   : > { %v632_v40 = vmul.f32 %v2963_v58, %v612_v31  ;;  %v658_v46 = vadd.f32 %v653_v14, %v640_v28  ;;  %v660_v21 = vadd.f32 %v653_v14, %v642_v41  ;;  %v665_v19 = vmax.f32 %v659_v20, 0.0 }
 0x104   : > { %v638_v59 = vadd.f32 %v632_v40, %v594_v48  ;;  %v648_v3 = vpop.permute.xlu0 %647  ;;  %v600_v38 = vpop.permute.xlu1 %599  ;;  %v664_v10 = vmax.f32 %v658_v46, 0.0  ;;  %v666_v5 = vmax.f32 %v660_v21, 0.0  ;;  %v687_v15 = vmul.f32 %v2845_v56, %v665_v19 }
 0x105   : > { %v614_v62 = vsel %vm611_vm8, %v600_v38, %v604_v27  ;;  %v616_v14 = vsel %vm611_vm8, %v608_v8, %v600_v38 }
 0x106   : > { %v656_v30 = vadd.f32 %v648_v3, %v638_v59  ;;  %v631_v26 = vmul.f32 %v2963_v58, %v614_v62  ;;  %v633_v35 = vmul.f32 %v2963_v58, %v616_v14  ;;  %v686_v32 = vmul.f32 %v2853_v49, %v664_v10  ;;  %728 = vmatprep.subr.mxu0 %v687_v15 }
 0x107   : > { %v688_v57 = vmul.f32 %v3066_v16, %v666_v5 }
 0x108   : > { %v637_v50 = vadd.f32 %v631_v26, %v593_v6  ;;  %v639_v45 = vadd.f32 %v633_v35, %v595_v11  ;;  %v3077_v0 = vpop.permute.xlu0 %693  ;;  %v876_v4 = vpop.permute.xlu1 %875  ;;  %729 = vmatpush1.msra.mxu0 %v686_v32  ;;  %v662_v17 = vmax.f32 %v656_v30, 0.0 }
 0x109   : > { %2152 = vmatpush3.msra.mxu1 %v688_v57  ;;  %v881_v15 = vmul.f32 0.0, %v876_v4 }
 0x10a   : > { %v684_v53 = vmul.f32 %v2845_v56, %v662_v17  ;;  %2153 = vmatprep.subr.mxu1 %v3853_v7  ;;  %v655_v51 = vadd.f32 %v648_v3, %v637_v50  ;;  %v657_v24 = vadd.f32 %v648_v3, %v639_v45 }
 0x10c   : > { %v3081_v58 = vpop.permute.xlu0 %912  ;;  %730 = vmatprep.subr.mxu0 %v684_v53  ;;  %v661_v1 = vmax.f32 %v655_v51, 0.0  ;;  %v663_v23 = vmax.f32 %v657_v24, 0.0  ;;  %v3083_v18 = vpop.permute.xlu1 %870 }
 0x10e   : > { %v683_v25 = vmul.f32 %v2853_v49, %v661_v1  ;;  %v685_v9 = vmul.f32 %v3066_v16, %v663_v23 }
 0x110   : > { %v3090_v39 = vpop.permute.xlu0 %907  ;;  %731 = vmatpush1.msra.mxu0 %v683_v25  ;;  %2154 = vmatpush3.msra.mxu1 %v685_v9  ;;  %v3092_v60 = vpop.permute.xlu1 %955 }
 0x111   : > { %2089 = vmatmul.mubr.msk.f32.vlgmr.msra.gmra.mxu0 %vm696_vm9, %v689_v34  ;;  %2156 = vmatmul.mubr.msk.f32.vlgmr.msra.gmra.mxu1 %vm696_vm9, %v689_v34 }
 0x112   : > { %2158 = vmatprep.subr.mxu1 %v3853_v7  ;;  %2162 = vmatprep.mubr.msk.f32.mxu1 %vm2383_vm0, %v3853_v7 }
 0x113   : > { %1335 = vmatprep.mubr.f32.mxu0 %v3853_v7 }
 0x114   : > { %v2271_v37 = vpop.permute.xlu0 %2270  ;;  %v3100_v52 = vpop.permute.xlu1 %950 }
 0x115   : > { %v2273_v31 = vunpack.i.h.bf16 %v2271_v37  ;;  %v2272_v20 = vunpack.i.l.bf16 %v2271_v37 }
 0x117   : > { %v899_v43 = vsel %vm304_vm1, %v2272_v20, %v2273_v31 }
 0x118   : > { %v3102_v33 = vpop.permute.xlu0 %998  ;;  %v895_v36 = vpop.permute.xlu1 %894  ;;  %v919_v10 = vmul.f32 %v3081_v58, %v899_v43 }
 0x119   : > { %v901_v45 = vsel %vm304_vm1, %v895_v36, %v2272_v20  ;;  %v897_v24 = vsel %vm304_vm1, %v2273_v31, %v895_v36 }
 0x11a   : > { %v925_v50 = vadd.f32 %v919_v10, %v881_v15  ;;  %v918_v25 = vmul.f32 %v3081_v58, %v901_v45  ;;  %v920_v36 = vmul.f32 %v3081_v58, %v897_v24 }
 0x11c   : > { %v2276_v2 = vpop.permute.xlu0 %2275  ;;  %v3104_v12 = vpop.permute.xlu1 %993 }
 0x11d   : > { %v2278_v48 = vunpack.i.h.bf16 %v2276_v2  ;;  %v2277_v40 = vunpack.i.l.bf16 %v2276_v2 }
 0x11f   : > { %v942_v6 = vsel %vm347_vm2, %v2277_v40, %v2278_v48 }
 0x120   : > { %v3106_v29 = vpop.permute.xlu0 %1041  ;;  %v2281_v47 = vpop.permute.xlu1 %2280  ;;  %v962_v30 = vmul.f32 %v3092_v60, %v942_v6 }
 0x121   : > { %v2283_v19 = vunpack.i.h.bf16 %v2281_v47  ;;  %v2282_v13 = vunpack.i.l.bf16 %v2281_v47 }
 0x122   : > { %v968_v1 = vadd.f32 %v962_v30, %v925_v50  ;;  %v926_v50 = vadd.f32 %v920_v36, %v881_v15 }
 0x123   : > { %v985_v11 = vsel %vm391_vm3, %v2282_v13, %v2283_v19 }
 0x124   : > { %v938_v42 = vpop.permute.xlu0 %937  ;;  %v3108_v44 = vpop.permute.xlu1 %1084  ;;  %v1005_v17 = vmul.f32 %v3102_v33, %v985_v11 }
 0x125   : > { %v940_v2 = vsel %vm347_vm2, %v2278_v48, %v938_v42  ;;  %v944_v47 = vsel %vm347_vm2, %v938_v42, %v2277_v40 }
 0x126   : > { %v1011_v37 = vadd.f32 %v1005_v17, %v968_v1  ;;  %v961_v42 = vmul.f32 %v3092_v60, %v944_v47  ;;  %v963_v40 = vmul.f32 %v3092_v60, %v940_v2 }
 0x128   : > { %v3110_v61 = vpop.permute.xlu0 %1036  ;;  %v981_v55 = vpop.permute.xlu1 %980  ;;  %v969_v1 = vadd.f32 %v963_v40, %v926_v50 }
 0x129   : > { %v983_v6 = vsel %vm391_vm3, %v2283_v19, %v981_v55 }
 0x12a   : > { %v1006_v60 = vmul.f32 %v3102_v33, %v983_v6 }
 0x12c   : > { %v3112_v27 = vpop.permute.xlu0 %2285  ;;  %v3114_v8 = vpop.permute.xlu1 %1079 }
 0x12d   : > { %v2288_v59 = vunpack.i.h.bf16 %v3112_v27  ;;  %v2287_v3 = vunpack.i.l.bf16 %v3112_v27 }
 0x12f   : > { %v1028_v26 = vsel %vm435_vm4, %v2287_v3, %v2288_v59 }
 0x130   : > { %v3116_v28 = vpop.permute.xlu0 %1127  ;;  %v3118_v41 = vpop.permute.xlu1 %2290  ;;  %v1048_v23 = vmul.f32 %v3106_v29, %v1028_v26 }
 0x131   : > { %v2293_v62 = vunpack.i.h.bf16 %v3118_v41  ;;  %v2292_v14 = vunpack.i.l.bf16 %v3118_v41 }
 0x132   : > { %v1054_v48 = vadd.f32 %v1048_v23, %v1011_v37 }
 0x133   : > { %v1069_v7 = vsel %vm479_vm5, %v2292_v14, %v2293_v62 }
 0x134   : > { %v1024_v63 = vpop.permute.xlu0 %1023  ;;  %v3120_v54 = vpop.permute.xlu1 %1170  ;;  %v1091_v27 = vmul.f32 %v3108_v44, %v1069_v7 }
 0x135   : > { %v1026_v26 = vsel %vm435_vm4, %v2288_v59, %v1024_v63  ;;  %v1030_v19 = vsel %vm435_vm4, %v1024_v63, %v2287_v3 }
 0x136   : > { %v1097_v30 = vadd.f32 %v1091_v27, %v1054_v48  ;;  %v1047_v63 = vmul.f32 %v3106_v29, %v1030_v19  ;;  %v1049_v3 = vmul.f32 %v3106_v29, %v1026_v26 }
 0x138   : > { %v3122_v46 = vpop.permute.xlu0 %1122  ;;  %v1059_v21 = vpop.permute.xlu1 %1058 }
 0x139   : > { %v1071_v17 = vsel %vm479_vm5, %v1059_v21, %v2292_v14 }
 0x13c   : > { %v2296_v38 = vpop.permute.xlu0 %2295  ;;  %v3131_v5 = vpop.permute.xlu1 %1165 }
 0x13d   : > { %v2298_v35 = vunpack.i.h.bf16 %v2296_v38  ;;  %v2297_v32 = vunpack.i.l.bf16 %v2296_v38  ;;  %v987_v38 = vsel %vm391_vm3, %v981_v55, %v2282_v13  ;;  %v924_v13 = vadd.f32 %v918_v25, %v881_v15 }
 0x13e   : > { %v1004_v45 = vmul.f32 %v3102_v33, %v987_v38 }
 0x13f   : > { %v1112_v9 = vsel %vm523_vm6, %v2297_v32, %v2298_v35  ;;  %v967_v24 = vadd.f32 %v961_v42, %v924_v13 }
 0x140   : > { %v3140_v57 = vpop.permute.xlu0 %1213  ;;  %v2301_v53 = vpop.permute.xlu1 %2300  ;;  %v1134_v10 = vmul.f32 %v3116_v28, %v1112_v9  ;;  %v1012_v9 = vadd.f32 %v1006_v60, %v969_v1  ;;  %v3210_v60 = vld [vmem:[%s2488_s19 + $0x18] sm:$0xff] }
 0x141   : > { %v2303_v4 = vunpack.i.h.bf16 %v2301_v53  ;;  %v2302_v51 = vunpack.i.l.bf16 %v2301_v53  ;;  %v1073_v53 = vsel %vm479_vm5, %v2293_v62, %v1059_v21  ;;  %v1010_v25 = vadd.f32 %v1004_v45, %v967_v24 }
 0x142   : > { %v1140_v7 = vadd.f32 %v1134_v10, %v1097_v30  ;;  %v1090_v21 = vmul.f32 %v3108_v44, %v1071_v17  ;;  %v1092_v62 = vmul.f32 %v3108_v44, %v1073_v53  ;;  %v1055_v27 = vadd.f32 %v1049_v3, %v1012_v9 }
 0x143   : > { %v1155_v31 = vsel %vm567_vm7, %v2302_v51, %v2303_v4  ;;  %v1053_v47 = vadd.f32 %v1047_v63, %v1010_v25 }
 0x144   : > { %v1102_v34 = vpop.permute.xlu0 %1101  ;;  %v2306_v41 = vpop.permute.xlu1 %2305  ;;  %v1177_v55 = vmul.f32 %v3120_v54, %v1155_v31  ;;  %v1098_v31 = vadd.f32 %v1092_v62, %v1055_v27  ;;  %v2120_v27 = vld [vmem:[%s3827_s1 + $0x138] sm:$0xff] }
 0x145   : > { %v2308_v20 = vunpack.i.h.bf16 %v2306_v41  ;;  %v2307_v43 = vunpack.i.l.bf16 %v2306_v41  ;;  %v1114_v23 = vsel %vm523_vm6, %v1102_v34, %v2297_v32  ;;  %v1116_v33 = vsel %vm523_vm6, %v2298_v35, %v1102_v34 }
 0x146   : > { %v1183_v14 = vadd.f32 %v1177_v55, %v1140_v7  ;;  %v1133_v32 = vmul.f32 %v3116_v28, %v1114_v23  ;;  %v1135_v35 = vmul.f32 %v3116_v28, %v1116_v33  ;;  %v1096_v36 = vadd.f32 %v1090_v21, %v1053_v47  ;;  %v2109_v47 = vld [vmem:[%s3828_s2 + $0x10] sm:$0xff] }
 0x147   : > { %v1198_v58 = vsel %vm611_vm8, %v2307_v43, %v2308_v20 }
 0x148   : > { %v3170_v11 = vpop.permute.xlu0 %1208  ;;  %v1220_v59 = vmul.f32 %v3140_v57, %v1198_v58  ;;  %v1141_v48 = vadd.f32 %v1135_v35, %v1098_v31  ;;  %v2122_v35 = vld [vmem:[%s3827_s1 + $0x148] sm:$0xff]  ;;  %v2119_v31 = vld [vmem:[%s3827_s1 + $0x130] sm:$0xff] }
 0x14a   : > { %v1226_v2 = vadd.f32 %v1220_v59, %v1183_v14 }
 0x14c   : > { %v1145_v15 = vpop.permute.xlu0 %1144 }
 0x14d   : > { %v1157_v37 = vsel %vm567_vm7, %v1145_v15, %v2302_v51  ;;  %v1159_v29 = vsel %vm567_vm7, %v2303_v4, %v1145_v15  ;;  %v1139_v51 = vadd.f32 %v1133_v32, %v1096_v36  ;;  %v2112_v32 = vld [vmem:[%s3830_s4 + $0x4] sm:$0xf] }
 0x14e   : > { %v1176_v6 = vmul.f32 %v3120_v54, %v1157_v37  ;;  %v1178_v44 = vmul.f32 %v3120_v54, %v1159_v29  ;;  %v2116_v29 = vld [vmem:[%s3827_s1 + $0x168] sm:$0xff]  ;;  %v2121_v36 = vld [vmem:[%s3827_s1 + $0x140] sm:$0xff] }
 0x150   : > { %v1239_v34 = vpop.permute.xlu0 %1238  ;;  %v1182_v40 = vadd.f32 %v1176_v6, %v1139_v51  ;;  %v1184_v58 = vadd.f32 %v1178_v44, %v1141_v48  ;;  %v2124_v6 = vld [vmem:[%s3827_s1 + $0x158] sm:$0xff]  ;;  %v2128_v51 = vld [vmem:[%s3827_s1 + $0x188] sm:$0xff] }
 0x151   : > { %v1245_v41 = vadd.f32 %v1239_v34, %v1226_v2  ;;  %v2115_v2 = vld [vmem:[%s3827_s1 + $0x160] sm:$0xff]  ;;  %v2126_v44 = vld [vmem:[%s3827_s1 + $0x178] sm:$0xff] }
 0x152   : > { %v2130_v48 = vld [vmem:[%s3827_s1 + $0x198] sm:$0xff] }
 0x153   : > { %v1251_v38 = vmax.f32 %v1245_v41, 0.0  ;;  %v2117_v41 = vld [vmem:[%s3827_s1 + $0x120] sm:$0xff] }
 0x154   : > { %v1188_v10 = vpop.permute.xlu0 %1187 }
 0x155   : > { %v1200_v4 = vsel %vm611_vm8, %v1188_v10, %v2307_v43  ;;  %v1202_v42 = vsel %vm611_vm8, %v2308_v20, %v1188_v10  ;;  %v1257_v28 = vmul.f32 %v1251_v38, %v2845_v56  ;;  %v2123_v38 = vld [vmem:[%s3827_s1 + $0x150] sm:$0xff] }
 0x156   : > { %v1219_v30 = vmul.f32 %v3140_v57, %v1200_v4  ;;  %v1221_v26 = vmul.f32 %v3140_v57, %v1202_v42  ;;  %v2125_v10 = vld [vmem:[%s3827_s1 + $0x170] sm:$0xff]  ;;  %v2132_v4 = vld [vmem:[%s3827_s1 + $0x1a8] sm:$0xff]  ;;  %v2127_v42 = vld [vmem:[%s3827_s1 + $0x180] sm:$0xff] }
 0x157   : > { %1299 = vmatprep.subr.mxu0 %v1257_v28  ;;  %v2134_v28 = vld [vmem:[%s3828_s2 + $0x28] sm:$0xff] }
 0x158   : > { %v1225_v54 = vadd.f32 %v1219_v30, %v1182_v40  ;;  %v1227_v19 = vadd.f32 %v1221_v26, %v1184_v58  ;;  %v2129_v40 = vld [vmem:[%s3827_s1 + $0x190] sm:$0xff]  ;;  %v2131_v58 = vld [vmem:[%s3827_s1 + $0x1a0] sm:$0xff] }
 0x15a   : > { %v1244_v55 = vadd.f32 %v1239_v34, %v1225_v54  ;;  %v1246_v13 = vadd.f32 %v1239_v34, %v1227_v19  ;;  %v2118_v34 = vld [vmem:[%s3827_s1 + $0x128] sm:$0xff] }
 0x15c   : > { %v1250_v50 = vmax.f32 %v1244_v55, 0.0  ;;  %v1252_v45 = vmax.f32 %v1246_v13, 0.0 }
 0x15e   : > { %v1256_v43 = vmul.f32 %v1250_v50, %v2853_v49  ;;  %v1258_v20 = vmul.f32 %v1252_v45, %v3066_v16 }
 0x160   : > { %1300 = vmatpush1.msra.mxu0 %v1256_v43  ;;  %2159 = vmatpush3.msra.mxu1 %v1258_v20 }
 0x161   : > { %2160 = vmatprep.subr.mxu1 %v3210_v60 }
 0x1d1   : > { %v766_v17 = vpop.f32.mrf.mxu0  ;;  %v837_v57 = vpop.f32.mrf.mxu1 }
 0x1d2   : > { %v767_v53 = vadd.f32 %v766_v17, %v3077_v0  ;;  %v838_v7 = vadd.f32 %v837_v57, %v3077_v0 }
 0x1d3   : > { %v768_v59 = vpop.f32.mrf.mxu0  ;;  %v2157_v24 = vpop.f32.mrf.mxu1 }
 0x1d4   : > { %v841_v1 = vmax.f32 %v767_v53, 0.0  ;;  %v843_v63 = vmax.f32 %v838_v7, 0.0  ;;  %v769_v3 = vadd.f32 %v768_v59, %v3077_v0 }
 0x1d6   : > { %v844_v15 = vmul.f32 %v841_v1, %v2853_v49  ;;  %v846_v23 = vmul.f32 %v843_v63, %v3066_v16  ;;  %v842_v33 = vmax.f32 %v769_v3, 0.0 }
 0x1d8   : > { %v850_v14 = vrot.slane %v844_v15, 4  ;;  %v852_v25 = vrot.slane %v846_v23, 4  ;;  %v845_v9 = vmul.f32 %v842_v33, %v2845_v56 }
 0x1da   : > { %856 = vst [vmem:[%s2488_s19] sm:$0xf0] %v850_v14  ;;  %858 = vst [vmem:[%s2488_s19 + $0x10] sm:$0xf0] %v852_v25  ;;  %v851_v21 = vrot.slane %v845_v9, 4 }
 0x1dc   : > { %857 = vst [vmem:[%s2488_s19 + $0x8] sm:$0xf0] %v851_v21 }
 0x1e1   : > { %v3223_v62 = vld [vmem:[%s2488_s19 + $0x10] sm:$0xff]  ;;  %v3238_v0 = vld [vmem:[%s2488_s19] sm:$0xff] }
 0x1e2   : > { %935 = vrot.lane.b32.xlu0 %v3223_v62, %s2376_s18  ;;  %892 = vrot.lane.b32.xlu1 %v3223_v62, %s2375_s17  ;;  %v880_v25 = vmul.f32 %v3083_v18, %v3223_v62 }
 0x1e3   : > { %v3253_v37 = vld [vmem:[%s2488_s19 + $0x8] sm:$0xff] }
 0x1e4   : > { %v879_v14 = vmul.f32 %v3083_v18, %v3253_v37 }
 0x1e6   : > { %1021 = vrot.lane.b32.xlu0 %v3223_v62, %s3840_s15  ;;  %978 = vrot.lane.b32.xlu1 %v3223_v62, %s3846_s11 }
 0x1ea   : > { %1107 = vrot.lane.b32.xlu0 %v3223_v62, %s3850_s16  ;;  %1064 = vrot.lane.b32.xlu1 %v3223_v62, %s3842_s10 }
 0x1ee   : > { %1150 = vrot.lane.b32.xlu0 %v3223_v62, %s3851_s26  ;;  %927 = vrot.lane.b32.xlu1 %v3238_v0, %s2376_s18 }
 0x1f2   : > { %1013 = vrot.lane.b32.xlu1 %v3238_v0, %s3840_s15  ;;  %884 = vrot.lane.b32.xlu0 %v3238_v0, %s2375_s17 }
 0x1f6   : > { %1056 = vrot.lane.b32.xlu1 %v3238_v0, %s3842_s10  ;;  %970 = vrot.lane.b32.xlu0 %v3238_v0, %s3846_s11 }
 0x1fa   : > { %1099 = vrot.lane.b32.xlu1 %v3238_v0, %s3850_s16  ;;  %931 = vrot.lane.b32.xlu0 %v3253_v37, %s2376_s18 }
 0x1fe   : > { %1142 = vrot.lane.b32.xlu1 %v3238_v0, %s3851_s26  ;;  %1017 = vrot.lane.b32.xlu0 %v3253_v37, %s3840_s15 }
 0x202   : > { %888 = vrot.lane.b32.xlu1 %v3253_v37, %s2375_s17  ;;  %1060 = vrot.lane.b32.xlu0 %v3253_v37, %s3842_s10 }
 0x206   : > { %974 = vrot.lane.b32.xlu1 %v3253_v37, %s3846_s11  ;;  %1193 = vrot.lane.b32.xlu0 %v3223_v62, %s3844_s28  ;;  %s3854_s11 = smov 17  }
 0x20a   : > { %1103 = vrot.lane.b32.xlu1 %v3253_v37, %s3850_s16  ;;  %1185 = vrot.lane.b32.xlu0 %v3238_v0, %s3844_s28 }
 0x20e   : > { %1146 = vrot.lane.b32.xlu1 %v3253_v37, %s3851_s26  ;;  %1437 = vperm.xlu0 %2227, %v2116_v29  }
 0x212   : > { %1189 = vrot.lane.b32.xlu1 %v3253_v37, %s3844_s28  ;;  %1432 = vperm.xlu0 %2227, %v2115_v2   ;;  %s2384_s28 = smov [#allocation2]  }
 0x213   : > { %s2315_s14 = sshll.u32 %s2384_s28, 4  ;;  %s2316_s14 = int_to_ptr.vmem [resolvable:$false] %s2315_s14 }
 0x214   : > { %s2317_s15 = scalar_lea.vmem %s2316_s14, 1536 }
 0x216   : > { %1233 = vperm.xlu1 %2228, %v2109_v47   ;;  %1517 = vperm.xlu0 %2227, %v2120_v27  }
 0x21a   : > { %1265 = vperm.xlu1 %2228, %v2112_v32   ;;  %1560 = vperm.xlu0 %2227, %v2122_v35  }
 0x21e   : > { %1474 = vperm.xlu1 %2228, %v2118_v34   ;;  %1446 = vrot.lane.b32.xlu0 %v3238_v0, %s2375_s17  ;;  %v878_v34 = vmul.f32 %v3083_v18, %v3238_v0 }
 0x222   : > { %1469 = vperm.xlu1 %2228, %v2117_v41   ;;  %1555 = vperm.xlu0 %2227, %v2121_v36  }
 0x226   : > { %1512 = vperm.xlu1 %2228, %v2119_v31   ;;  %1454 = vrot.lane.b32.xlu0 %v3223_v62, %s2375_s17 }
 0x22a   : > { %1603 = vperm.xlu1 %2228, %v2124_v6   ;;  %1489 = vrot.lane.b32.xlu0 %v3238_v0, %s2376_s18 }
 0x22e   : > { %1646 = vperm.xlu1 %2228, %v2126_v44   ;;  %1598 = vperm.xlu0 %2227, %v2123_v38  }
 0x232   : > { %1689 = vperm.xlu1 %2228, %v2128_v51   ;;  %1497 = vrot.lane.b32.xlu0 %v3223_v62, %s2376_s18 }
 0x236   : > { %1732 = vperm.xlu1 %2228, %v2130_v48   ;;  %1532 = vrot.lane.b32.xlu0 %v3238_v0, %s3854_s11 }
 0x23a   : > { %1626 = vrot.lane.b32.xlu1 %v3223_v62, %s3855_s20  ;;  %1641 = vperm.xlu0 %2227, %v2125_v10  }
 0x23e   : > { %1775 = vperm.xlu1 %2228, %v2132_v4   ;;  %1540 = vrot.lane.b32.xlu0 %v3223_v62, %s3854_s11 }
 0x242   : > { %1669 = vrot.lane.b32.xlu1 %v3223_v62, %s3850_s16  ;;  %1575 = vrot.lane.b32.xlu0 %v3238_v0, %s3856_s29 }
 0x246   : > { %1661 = vrot.lane.b32.xlu1 %v3238_v0, %s3850_s16  ;;  %1684 = vperm.xlu0 %2227, %v2127_v42  }
 0x24a   : > { %1800 = vperm.xlu1 %2228, %v2134_v28   ;;  %1583 = vrot.lane.b32.xlu0 %v3223_v62, %s3856_s29 }
 0x24e   : > { %1450 = vrot.lane.b32.xlu1 %v3253_v37, %s2375_s17  ;;  %1727 = vperm.xlu0 %2227, %v2129_v40  }
 0x252   : > { %1493 = vrot.lane.b32.xlu1 %v3253_v37, %s2376_s18  ;;  %1618 = vrot.lane.b32.xlu0 %v3238_v0, %s3855_s20 }
 0x254   : > { %v936_v30 = vpop.permute.xlu0 %935  ;;  %v893_v26 = vpop.permute.xlu1 %892 }
 0x256   : > { %1536 = vrot.lane.b32.xlu1 %v3253_v37, %s3854_s11  ;;  %1770 = vperm.xlu0 %2227, %v2131_v58  }
 0x258   : > { %v3372_v54 = vpop.permute.xlu0 %1021  ;;  %v979_v19 = vpop.permute.xlu1 %978 }
 0x25a   : > { %1579 = vrot.lane.b32.xlu1 %v3253_v37, %s3856_s29  ;;  %1712 = vrot.lane.b32.xlu0 %v3223_v62, %s3851_s26 }
 0x25c   : > { %v3378_v55 = vpop.permute.xlu0 %1107  ;;  %v1065_v13 = vpop.permute.xlu1 %1064 }
 0x25e   : > { %1708 = vrot.lane.b32.xlu1 %v3253_v37, %s3851_s26  ;;  %1704 = vrot.lane.b32.xlu0 %v3238_v0, %s3851_s26 }
 0x260   : > { %v3384_v50 = vpop.permute.xlu0 %1150  ;;  %v928_v45 = vpop.permute.xlu1 %927 }
 0x261   : > { %v943_v51 = vsel %vm347_vm2, %v936_v30, %v928_v45 }
 0x262   : > { %1622 = vrot.lane.b32.xlu0 %v3253_v37, %s3855_s20  ;;  %v958_v40 = vmul.f32 %v3100_v52, %v943_v51 }
 0x264   : > { %v1014_v43 = vpop.permute.xlu1 %1013  ;;  %v885_v20 = vpop.permute.xlu0 %884 }
 0x265   : > { %v900_v1 = vsel %vm304_vm1, %v893_v26, %v885_v20 }
 0x266   : > { %1665 = vrot.lane.b32.xlu0 %v3253_v37, %s3850_s16  ;;  %v915_v29 = vmul.f32 %v3090_v39, %v900_v1 }
 0x268   : > { %v1057_v17 = vpop.permute.xlu1 %1056  ;;  %v971_v57 = vpop.permute.xlu0 %970  ;;  %v921_v48 = vadd.f32 %v915_v29, %v878_v34 }
 0x269   : > { %v986_v42 = vsel %vm391_vm3, %v979_v19, %v971_v57 }
 0x26a   : > { %1751 = vrot.lane.b32.xlu0 %v3253_v37, %s3857_s13 }
 0x26c   : > { %v1100_v53 = vpop.permute.xlu1 %1099  ;;  %v932_v7 = vpop.permute.xlu0 %931 }
 0x26d   : > { %v939_v3 = vsel %vm347_vm2, %v932_v7, %v936_v30  ;;  %v941_v15 = vsel %vm347_vm2, %v928_v45, %v932_v7  ;;  %v1072_v30 = vsel %vm479_vm5, %v1065_v13, %v1057_v17  ;;  %v1001_v7 = vmul.f32 %v3104_v12, %v986_v42 }
 0x26e   : > { %v959_v2 = vmul.f32 %v3100_v52, %v941_v15  ;;  %v960_v47 = vmul.f32 %v3100_v52, %v939_v3  ;;  %v1029_v52 = vsel %vm435_vm4, %v3372_v54, %v1014_v43  ;;  %v1115_v15 = vsel %vm523_vm6, %v3378_v55, %v1100_v53 }
 0x270   : > { %v3392_v59 = vpop.permute.xlu1 %1142  ;;  %v1018_v24 = vpop.permute.xlu0 %1017 }
 0x271   : > { %v1025_v18 = vsel %vm435_vm4, %v1018_v24, %v3372_v54  ;;  %v1027_v28 = vsel %vm435_vm4, %v1014_v43, %v1018_v24 }
 0x272   : > { %v1046_v58 = vmul.f32 %v3110_v61, %v1025_v18  ;;  %v1045_v1 = vmul.f32 %v3110_v61, %v1027_v28 }
 0x274   : > { %v889_v63 = vpop.permute.xlu1 %888  ;;  %v1061_v41 = vpop.permute.xlu0 %1060 }
 0x275   : > { %v896_v23 = vsel %vm304_vm1, %v889_v63, %v893_v26  ;;  %v898_v33 = vsel %vm304_vm1, %v885_v20, %v889_v63  ;;  %v964_v20 = vadd.f32 %v958_v40, %v921_v48 }
 0x276   : > { %v916_v9 = vmul.f32 %v3090_v39, %v898_v33  ;;  %v917_v21 = vmul.f32 %v3090_v39, %v896_v23 }
 0x277   : > { %v1007_v23 = vadd.f32 %v1001_v7, %v964_v20 }
 0x278   : > { %v922_v27 = vadd.f32 %v916_v9, %v879_v14  ;;  %v923_v32 = vadd.f32 %v917_v21, %v880_v25  ;;  %v975_v35 = vpop.permute.xlu1 %974  ;;  %v1194_v45 = vpop.permute.xlu0 %1193  ;;  %v1132_v9 = vmul.f32 %v3122_v46, %v1115_v15 }
 0x279   : > { %v982_v36 = vsel %vm391_vm3, %v975_v35, %v979_v19  ;;  %v984_v31 = vsel %vm391_vm3, %v971_v57, %v975_v35  ;;  %v1068_v19 = vsel %vm479_vm5, %v1061_v41, %v1065_v13  ;;  %v1089_v57 = vmul.f32 %v3114_v8, %v1072_v30 }
 0x27a   : > { %v965_v6 = vadd.f32 %v959_v2, %v922_v27  ;;  %v966_v44 = vadd.f32 %v960_v47, %v923_v32  ;;  %v1002_v39 = vmul.f32 %v3104_v12, %v984_v31  ;;  %v1003_v38 = vmul.f32 %v3104_v12, %v982_v36 }
 0x27b   : > { %v1070_v12 = vsel %vm479_vm5, %v1057_v17, %v1061_v41  ;;  %v1088_v33 = vmul.f32 %v3114_v8, %v1068_v19  ;;  %v1044_v13 = vmul.f32 %v3110_v61, %v1029_v52  ;;  %v1158_v17 = vsel %vm567_vm7, %v3384_v50, %v3392_v59  ;;  %v2111_v52 = vld [vmem:[%s3829_s3 + $0x4] sm:$0xf] }
 0x27c   : > { %v1009_v10 = vadd.f32 %v1003_v38, %v966_v44  ;;  %v1104_v4 = vpop.permute.xlu1 %1103  ;;  %v1008_v26 = vadd.f32 %v1002_v39, %v965_v6  ;;  %v1186_v25 = vpop.permute.xlu0 %1185  ;;  %v1087_v21 = vmul.f32 %v3114_v8, %v1070_v12  ;;  %v1175_v35 = vmul.f32 %v3131_v5, %v1158_v17 }
 0x27d   : > { %v1111_v54 = vsel %vm523_vm6, %v1104_v4, %v3378_v55  ;;  %v1113_v43 = vsel %vm523_vm6, %v1100_v53, %v1104_v4  ;;  %v1050_v53 = vadd.f32 %v1044_v13, %v1007_v23 }
 0x27e   : > { %v1052_v63 = vadd.f32 %v1046_v58, %v1009_v10  ;;  %v1051_v24 = vadd.f32 %v1045_v1, %v1008_v26  ;;  %v1130_v47 = vmul.f32 %v3122_v46, %v1113_v43  ;;  %v1131_v27 = vmul.f32 %v3122_v46, %v1111_v54 }
 0x27f   : > { %v1201_v46 = vsel %vm611_vm8, %v1194_v45, %v1186_v25 }
 0x280   : > { %v1147_v3 = vpop.permute.xlu1 %1146  ;;  %v1095_v14 = vadd.f32 %v1089_v57, %v1052_v63  ;;  %v1094_v29 = vadd.f32 %v1088_v33, %v1051_v24  ;;  %v1218_v18 = vmul.f32 %v3170_v11, %v1201_v46 }
 0x281   : > { %v1154_v61 = vsel %vm567_vm7, %v1147_v3, %v3384_v50  ;;  %v1156_v55 = vsel %vm567_vm7, %v3392_v59, %v1147_v3  ;;  %v1093_v50 = vadd.f32 %v1087_v21, %v1050_v53 }
 0x282   : > { %v1138_v32 = vadd.f32 %v1132_v9, %v1095_v14  ;;  %v1137_v36 = vadd.f32 %v1131_v27, %v1094_v29  ;;  %v1173_v59 = vmul.f32 %v3131_v5, %v1156_v55  ;;  %v1174_v31 = vmul.f32 %v3131_v5, %v1154_v61 }
 0x283   : > { %v1136_v6 = vadd.f32 %v1130_v47, %v1093_v50 }
 0x284   : > { %v1190_v2 = vpop.permute.xlu1 %1189  ;;  %v1181_v44 = vadd.f32 %v1175_v35, %v1138_v32  ;;  %v1180_v10 = vadd.f32 %v1174_v31, %v1137_v36 }
 0x285   : > { %v1197_v8 = vsel %vm611_vm8, %v1190_v2, %v1194_v45  ;;  %v1199_v34 = vsel %vm611_vm8, %v1186_v25, %v1190_v2  ;;  %v1179_v48 = vadd.f32 %v1173_v59, %v1136_v6 }
 0x286   : > { %v1216_v39 = vmul.f32 %v3170_v11, %v1199_v34  ;;  %v1217_v38 = vmul.f32 %v3170_v11, %v1197_v8  ;;  %v1224_v4 = vadd.f32 %v1218_v18, %v1181_v44 }
 0x288   : > { %v1222_v42 = vadd.f32 %v1216_v39, %v1179_v48  ;;  %v1223_v28 = vadd.f32 %v1217_v38, %v1180_v10 }
 0x289   : > { %v3473_v41 = vpop.permute.xlu0 %1437 }
 0x28d   : > { %v3481_v51 = vpop.permute.xlu0 %1432 }
 0x28e   : > { %v1440_v13 = vmul.f32 %v3481_v51, %v3238_v0 }
 0x291   : > { %v1234_v40 = vpop.permute.xlu1 %1233  ;;  %v3484_v5 = vpop.permute.xlu0 %1517 }
 0x292   : > { %v1241_v58 = vadd.f32 %v1234_v40, %v1222_v42  ;;  %v1242_v26 = vadd.f32 %v1234_v40, %v1223_v28  ;;  %v1243_v30 = vadd.f32 %v1234_v40, %v1224_v4 }
 0x294   : > { %v1247_v45 = vmax.f32 %v1241_v58, 0.0  ;;  %v1248_v20 = vmax.f32 %v1242_v26, 0.0  ;;  %v1249_v7 = vmax.f32 %v1243_v30, 0.0  ;;  %v1441_v30 = vmul.f32 %v3481_v51, %v3253_v37 }
 0x295   : > { %v3486_v1 = vpop.permute.xlu1 %1265  ;;  %v3488_v63 = vpop.permute.xlu0 %1560 }
 0x296   : > { %v1253_v11 = vmul.f32 %v1247_v45, %v2853_v49  ;;  %v1255_v3 = vmul.f32 %v1249_v7, %v3066_v16  ;;  %v1254_v19 = vmul.f32 %v1248_v20, %v2845_v56  ;;  %v1442_v45 = vmul.f32 %v3481_v51, %v3223_v62 }
 0x298   : > { %1301 = vmatprep.subr.mxu0 %v1254_v19  ;;  %2161 = vmatpush3.msra.mxu1 %v1255_v3 }
 0x299   : > { %v3496_v57 = vpop.permute.xlu1 %1474  ;;  %2163 = vmatmul.mubr.msk.f32.vlgmr.msra.gmra.mxu1 %vm696_vm9, %v2111_v52  ;;  %v1447_v24 = vpop.permute.xlu0 %1446  ;;  %1302 = vmatpush1.msra.mxu0 %v1253_v11 }
 0x29a   : > { %2113 = vmatmul.mubr.msk.f32.vlgmr.msra.gmra.mxu0 %vm696_vm9, %v2111_v52  ;;  %2165 = vmatprep.subr.mxu1 %v3210_v60 }
 0x29b   : > { %1897 = vmatprep.mubr.f32.mxu0 %v3210_v60  ;;  %2169 = vmatprep.mubr.msk.f32.mxu1 %vm2383_vm0, %v3210_v60 }
 0x29d   : > { %v1470_v15 = vpop.permute.xlu1 %1469  ;;  %v1556_v12 = vpop.permute.xlu0 %1555 }
 0x2a1   : > { %v1513_v23 = vpop.permute.xlu1 %1512  ;;  %v1455_v33 = vpop.permute.xlu0 %1454 }
 0x2a2   : > { %v1462_v14 = vsel %vm304_vm1, %v1455_v33, %v1447_v24 }
 0x2a3   : > { %v1477_v54 = vmul.f32 %v1470_v15, %v1462_v14 }
 0x2a5   : > { %v1483_v43 = vadd.f32 %v1477_v54, %v1440_v13  ;;  %v3508_v25 = vpop.permute.xlu1 %1603  ;;  %v1490_v9 = vpop.permute.xlu0 %1489 }
 0x2a9   : > { %v3510_v17 = vpop.permute.xlu1 %1646  ;;  %v1599_v21 = vpop.permute.xlu0 %1598 }
 0x2ad   : > { %v3512_v29 = vpop.permute.xlu1 %1689  ;;  %v1498_v2 = vpop.permute.xlu0 %1497 }
 0x2ae   : > { %v1505_v61 = vsel %vm347_vm2, %v1498_v2, %v1490_v9 }
 0x2af   : > { %v1520_v55 = vmul.f32 %v1513_v23, %v1505_v61 }
 0x2b1   : > { %v1526_v53 = vadd.f32 %v1520_v55, %v1483_v43  ;;  %v3516_v47 = vpop.permute.xlu1 %1732  ;;  %v1533_v27 = vpop.permute.xlu0 %1532 }
 0x2b5   : > { %v3518_v32 = vpop.permute.xlu1 %1626  ;;  %v3520_v35 = vpop.permute.xlu0 %1641 }
 0x2b9   : > { %v3522_v8 = vpop.permute.xlu1 %1775  ;;  %v1541_v34 = vpop.permute.xlu0 %1540 }
 0x2ba   : > { %v1548_v50 = vsel %vm391_vm3, %v1541_v34, %v1533_v27 }
 0x2bb   : > { %v1563_v36 = vmul.f32 %v1556_v12, %v1548_v50 }
 0x2bd   : > { %v1569_v59 = vadd.f32 %v1563_v36, %v1526_v53  ;;  %v3526_v31 = vpop.permute.xlu1 %1669  ;;  %v1576_v46 = vpop.permute.xlu0 %1575 }
 0x2c1   : > { %v3528_v6 = vpop.permute.xlu1 %1661  ;;  %v3530_v44 = vpop.permute.xlu0 %1684 }
 0x2c2   : > { %v1677_v39 = vsel %vm523_vm6, %v3526_v31, %v3528_v6 }
 0x2c3   : > { %v1694_v38 = vmul.f32 %v3530_v44, %v1677_v39 }
 0x2c5   : > { %v3537_v18 = vpop.permute.xlu1 %1800  ;;  %v1584_v48 = vpop.permute.xlu0 %1583 }
 0x2c6   : > { %v1591_v10 = vsel %vm435_vm4, %v1584_v48, %v1576_v46 }
 0x2c7   : > { %v1606_v4 = vmul.f32 %v1599_v21, %v1591_v10 }
 0x2c9   : > { %v1612_v42 = vadd.f32 %v1606_v4, %v1569_v59  ;;  %v1451_v28 = vpop.permute.xlu1 %1450  ;;  %v1728_v40 = vpop.permute.xlu0 %1727 }
 0x2ca   : > { %v1458_v58 = vsel %vm304_vm1, %v1451_v28, %v1455_v33  ;;  %v1460_v26 = vsel %vm304_vm1, %v1447_v24, %v1451_v28 }
 0x2cb   : > { %v1478_v20 = vmul.f32 %v1470_v15, %v1460_v26  ;;  %v1479_v7 = vmul.f32 %v1470_v15, %v1458_v58 }
 0x2cd   : > { %v1484_v11 = vadd.f32 %v1478_v20, %v1441_v30  ;;  %v1485_v3 = vadd.f32 %v1479_v7, %v1442_v45  ;;  %v1494_v19 = vpop.permute.xlu1 %1493  ;;  %v1619_v52 = vpop.permute.xlu0 %1618 }
 0x2ce   : > { %v1501_v14 = vsel %vm347_vm2, %v1494_v19, %v1498_v2  ;;  %v1503_v33 = vsel %vm347_vm2, %v1490_v9, %v1494_v19  ;;  %v1634_v24 = vsel %vm479_vm5, %v3518_v32, %v1619_v52 }
 0x2cf   : > { %v1521_v37 = vmul.f32 %v1513_v23, %v1503_v33  ;;  %v1522_v13 = vmul.f32 %v1513_v23, %v1501_v14  ;;  %v1651_v51 = vmul.f32 %v3520_v35, %v1634_v24 }
 0x2d1   : > { %v1527_v54 = vadd.f32 %v1521_v37, %v1484_v11  ;;  %v1528_v15 = vadd.f32 %v1522_v13, %v1485_v3  ;;  %v1537_v43 = vpop.permute.xlu1 %1536  ;;  %v3557_v61 = vpop.permute.xlu0 %1770 }
 0x2d2   : > { %v1544_v55 = vsel %vm391_vm3, %v1537_v43, %v1541_v34  ;;  %v1546_v2 = vsel %vm391_vm3, %v1533_v27, %v1537_v43 }
 0x2d3   : > { %v1564_v9 = vmul.f32 %v1556_v12, %v1546_v2  ;;  %v1565_v53 = vmul.f32 %v1556_v12, %v1544_v55 }
 0x2d5   : > { %v1570_v50 = vadd.f32 %v1564_v9, %v1527_v54  ;;  %v1571_v36 = vadd.f32 %v1565_v53, %v1528_v15  ;;  %v1580_v59 = vpop.permute.xlu1 %1579  ;;  %v1713_v39 = vpop.permute.xlu0 %1712 }
 0x2d6   : > { %v1587_v23 = vsel %vm435_vm4, %v1580_v59, %v1584_v48  ;;  %v1589_v10 = vsel %vm435_vm4, %v1576_v46, %v1580_v59 }
 0x2d7   : > { %v1607_v4 = vmul.f32 %v1599_v21, %v1589_v10  ;;  %v1608_v28 = vmul.f32 %v1599_v21, %v1587_v23 }
 0x2d9   : > { %v1613_v58 = vadd.f32 %v1607_v4, %v1570_v50  ;;  %v1614_v26 = vadd.f32 %v1608_v28, %v1571_v36  ;;  %v1709_v34 = vpop.permute.xlu1 %1708  ;;  %v1705_v30 = vpop.permute.xlu0 %1704  ;;  %v2133_v28 = vld [vmem:[%s3828_s2 + $0x20] sm:$0xff] }
 0x2da   : > { %v1716_v27 = vsel %vm567_vm7, %v1709_v34, %v1713_v39  ;;  %v1718_v12 = vsel %vm567_vm7, %v1705_v30, %v1709_v34  ;;  %v1720_v45 = vsel %vm567_vm7, %v1713_v39, %v1705_v30 }
 0x2db   : > { %v1657_v20 = vadd.f32 %v1651_v51, %v1614_v26  ;;  %v1736_v48 = vmul.f32 %v1728_v40, %v1716_v27  ;;  %v1735_v7 = vmul.f32 %v1728_v40, %v1718_v12  ;;  %v1737_v46 = vmul.f32 %v1728_v40, %v1720_v45 }
 0x2dd   : > { %v1700_v11 = vadd.f32 %v1694_v38, %v1657_v20  ;;  %v1623_v3 = vpop.permute.xlu0 %1622 }
 0x2de   : > { %v1630_v21 = vsel %vm479_vm5, %v1623_v3, %v3518_v32  ;;  %v1632_v19 = vsel %vm479_vm5, %v1619_v52, %v1623_v3 }
 0x2df   : > { %v3578_v14 = vadd.f32 %v1737_v46, %v1700_v11  ;;  %v1649_v33 = vmul.f32 %v3520_v35, %v1632_v19  ;;  %v1650_v24 = vmul.f32 %v3520_v35, %v1630_v21 }
 0x2e1   : > { %v1655_v37 = vadd.f32 %v1649_v33, %v1612_v42  ;;  %v1656_v13 = vadd.f32 %v1650_v24, %v1613_v58  ;;  %v1666_v51 = vpop.permute.xlu0 %1665  ;;  %v2136_v58 = vld [vmem:[%s3830_s4 + $0x8] sm:$0xf] }
 0x2e2   : > { %v1673_v38 = vsel %vm523_vm6, %v1666_v51, %v3526_v31  ;;  %v1675_v32 = vsel %vm523_vm6, %v3528_v6, %v1666_v51 }
 0x2e3   : > { %v1692_v40 = vmul.f32 %v3530_v44, %v1675_v32  ;;  %v1693_v52 = vmul.f32 %v3530_v44, %v1673_v38 }
 0x2e5   : > { %v1698_v54 = vadd.f32 %v1692_v40, %v1655_v37  ;;  %v1699_v15 = vadd.f32 %v1693_v52, %v1656_v13  ;;  %v3650_v34 = vpop.permute.xlu0 %1751 }
 0x2e7   : > { %v3590_v35 = vadd.f32 %v1736_v48, %v1699_v15  ;;  %v3592_v42 = vadd.f32 %v1735_v7, %v1698_v54 }
 0x359   : > { %v1408_v43 = vpop.f32.mrf.mxu1 }
 0x35a   : > { %v1409_v31 = vadd.f32 %v1408_v43, %v3486_v1  ;;  %v1337_v55 = vpop.f32.mrf.mxu0 }
 0x35b   : > { %v1338_v6 = vadd.f32 %v1337_v55, %v3486_v1  ;;  %v2164_v2 = vpop.f32.mrf.mxu1 }
 0x35c   : > { %v1414_v9 = vmax.f32 %v1409_v31, 0.0  ;;  %v1339_v44 = vpop.f32.mrf.mxu0 }
 0x35d   : > { %v1412_v53 = vmax.f32 %v1338_v6, 0.0  ;;  %v1340_v50 = vadd.f32 %v1339_v44, %v3486_v1 }
 0x35e   : > { %v1417_v36 = vmul.f32 %v1414_v9, %v3066_v16 }
 0x35f   : > { %v1415_v59 = vmul.f32 %v1412_v53, %v2853_v49  ;;  %v1413_v39 = vmax.f32 %v1340_v50, 0.0 }
 0x360   : > { %1420 = vst [vmem:[%s2488_s19 + $0x28] sm:$0xf] %v1417_v36 }
 0x361   : > { %1418 = vst [vmem:[%s2488_s19 + $0x18] sm:$0xf] %v1415_v59  ;;  %v1416_v23 = vmul.f32 %v1413_v39, %v2845_v56 }
 0x363   : > { %1419 = vst [vmem:[%s2488_s19 + $0x20] sm:$0xf] %v1416_v23 }
 0x367   : > { %v3604_v10 = vld [vmem:[%s2488_s19 + $0x28] sm:$0xff] }
 0x368   : > { %1757 = vrot.lane.b32.xlu0 %v3604_v10, %s3857_s13  ;;  %1456 = vrot.lane.b32.xlu1 %v3604_v10, %s2375_s17  ;;  %v1424_v1 = vld [vmem:[%s2488_s19 + $0x18] sm:$0xff]  ;;  %v1445_v39 = vmul.f32 %v3473_v41, %v3604_v10 }
 0x369   : > { %v1443_v37 = vmul.f32 %v3473_v41, %v1424_v1 }
 0x36a   : > { %v1425_v4 = vld [vmem:[%s2488_s19 + $0x20] sm:$0xff] }
 0x36c   : > { %1499 = vrot.lane.b32.xlu1 %v3604_v10, %s2376_s18  ;;  %1491 = vrot.lane.b32.xlu0 %v1424_v1, %s2376_s18 }
 0x370   : > { %1542 = vrot.lane.b32.xlu1 %v3604_v10, %s3854_s11  ;;  %1534 = vrot.lane.b32.xlu0 %v1424_v1, %s3854_s11 }
 0x374   : > { %1585 = vrot.lane.b32.xlu1 %v3604_v10, %s3856_s29  ;;  %1577 = vrot.lane.b32.xlu0 %v1424_v1, %s3856_s29 }
 0x378   : > { %1628 = vrot.lane.b32.xlu1 %v3604_v10, %s3855_s20  ;;  %1706 = vrot.lane.b32.xlu0 %v1424_v1, %s3851_s26 }
 0x37c   : > { %1671 = vrot.lane.b32.xlu1 %v3604_v10, %s3850_s16  ;;  %1452 = vrot.lane.b32.xlu0 %v1425_v4, %s2375_s17 }
 0x380   : > { %1714 = vrot.lane.b32.xlu1 %v3604_v10, %s3851_s26  ;;  %1624 = vrot.lane.b32.xlu0 %v1425_v4, %s3855_s20 }
 0x384   : > { %1667 = vrot.lane.b32.xlu0 %v1425_v4, %s3850_s16  ;;  %1448 = vrot.lane.b32.xlu1 %v1424_v1, %s2375_s17 }
 0x388   : > { %1710 = vrot.lane.b32.xlu0 %v1425_v4, %s3851_s26  ;;  %1620 = vrot.lane.b32.xlu1 %v1424_v1, %s3855_s20  ;;  %s2006_s26 = sshll.u32 %s2488_s19, 4  ;;  %s3779_s26 = int_to_ptr.vmem [resolvable:$true] %s2006_s26 }
 0x389   : > { %s2311_s12 = scalar_lea.vmem %s3779_s26, 768  ;;  %p2318_p0 = scmp.lt.s32.totalorder %s3779_s26, %s2316_s14 }
 0x38a   : > { %p2312_p11 = scmp.ne.s32.totalorder %s3779_s26, %s2311_s12  ;;  %p2319_p1 = scmp.lt.s32.totalorder %s2317_s15, %s2311_s12 }
 0x38c   : > { %1795 = vperm.xlu0 %2227, %v2133_v28   ;;  %1663 = vrot.lane.b32.xlu1 %v1424_v1, %s3850_s16  ;;  %s2174_s16 = smul.u32 768, %s2443_s25  ;;  %s3858_s25 = sand.u32 1, %s2363_s22  }
 0x38d   : > { %p2313_p12 = pnand %p2312_p11, %p2460_p5  ;;  %p2320_p2 = por %p2319_p1, %p2318_p0 }
 0x38f   : > { %p2314_p13 = pneg %p2313_p12 }
 0x390   : > { %1827 = vperm.xlu0 %2227, %v2136_v58   ;;  %1749 = vrot.lane.b32.xlu1 %v1424_v1, %s3857_s13  ;;  %v1444_v1 = vmul.f32 %v3473_v41, %v1425_v4 }
 0x391   : > { %p2321_p3 = pnand %p2320_p2, %p2314_p13 }
 0x394   : > { %1495 = vrot.lane.b32.xlu1 %v1425_v4, %s2376_s18 }
 0x398   : > { %1538 = vrot.lane.b32.xlu1 %v1425_v4, %s3854_s11 }
 0x39c   : > { %1581 = vrot.lane.b32.xlu1 %v1425_v4, %s3856_s29  ;;  %s3777_s29 = scalar_lea.hbm %s3832_s6, %s2174_s16 }
 0x3a0   : > { %1755 = vrot.lane.b32.xlu1 %v3223_v62, %s3857_s13 }
 0x3a4   : > { %1753 = vrot.lane.b32.xlu1 %v1425_v4, %s3857_s13 }
 0x3a8   : > { %1747 = vrot.lane.b32.xlu1 %v3238_v0, %s3857_s13  ;;  %s3786_s13 = scalar_lea.sflag [#allocation3], %s3858_s25 }
 0x3da   : > { %v1457_v26 = vpop.permute.xlu1 %1456  ;;  %v3652_v27 = vpop.permute.xlu0 %1757 }
 0x3de   : > { %v1500_v30 = vpop.permute.xlu1 %1499  ;;  %v1492_v45 = vpop.permute.xlu0 %1491 }
 0x3df   : > { %v1506_v13 = vsel %vm347_vm2, %v1500_v30, %v1492_v45 }
 0x3e0   : > { %v1523_v32 = vmul.f32 %v3484_v5, %v1506_v13 }
 0x3e2   : > { %v1543_v12 = vpop.permute.xlu1 %1542  ;;  %v1535_v7 = vpop.permute.xlu0 %1534 }
 0x3e3   : > { %v1549_v40 = vsel %vm391_vm3, %v1543_v12, %v1535_v7 }
 0x3e4   : > { %v1566_v43 = vmul.f32 %v3488_v63, %v1549_v40 }
 0x3e6   : > { %v1586_v20 = vpop.permute.xlu1 %1585  ;;  %v1578_v46 = vpop.permute.xlu0 %1577 }
 0x3e7   : > { %v1592_v6 = vsel %vm435_vm4, %v1586_v20, %v1578_v46 }
 0x3e8   : > { %v1609_v59 = vmul.f32 %v3508_v25, %v1592_v6 }
 0x3ea   : > { %v1629_v48 = vpop.permute.xlu1 %1628  ;;  %v1707_v21 = vpop.permute.xlu0 %1706 }
 0x3ee   : > { %v1672_v11 = vpop.permute.xlu1 %1671  ;;  %v1453_v24 = vpop.permute.xlu0 %1452 }
 0x3ef   : > { %v1459_v31 = vsel %vm304_vm1, %v1453_v24, %v1457_v26 }
 0x3f0   : > { %v1482_v50 = vmul.f32 %v3496_v57, %v1459_v31 }
 0x3f2   : > { %v3654_v3 = vpop.permute.xlu1 %1714  ;;  %v1625_v54 = vpop.permute.xlu0 %1624 }
 0x3f3   : > { %v1631_v4 = vsel %vm479_vm5, %v1625_v54, %v1629_v48 }
 0x3f4   : > { %v1653_v6 = vmul.f32 %v3510_v17, %v1631_v4 }
 0x3f6   : > { %v1449_v62 = vpop.permute.xlu1 %1448  ;;  %v1668_v23 = vpop.permute.xlu0 %1667 }
 0x3f7   : > { %v1463_v0 = vsel %vm304_vm1, %v1457_v26, %v1449_v62  ;;  %v1461_v55 = vsel %vm304_vm1, %v1449_v62, %v1453_v24 }
 0x3f8   : > { %v1480_v33 = vmul.f32 %v3496_v57, %v1463_v0  ;;  %v1481_v36 = vmul.f32 %v3496_v57, %v1461_v55  ;;  %v1488_v0 = vadd.f32 %v1482_v50, %v1445_v39  ;;  %v1721_v55 = vsel %vm567_vm7, %v3654_v3, %v1707_v21 }
 0x3fa   : > { %v1621_v19 = vpop.permute.xlu1 %1620  ;;  %v1486_v38 = vadd.f32 %v1480_v33, %v1443_v37  ;;  %v1487_v10 = vadd.f32 %v1481_v36, %v1444_v1 }
 0x3fb   : > { %v1633_v28 = vsel %vm479_vm5, %v1621_v19, %v1625_v54 }
 0x3fc   : > { %v1529_v15 = vadd.f32 %v1523_v32, %v1486_v38  ;;  %v1652_v24 = vmul.f32 %v3510_v17, %v1633_v28  ;;  %v1711_v32 = vpop.permute.xlu0 %1710 }
 0x3fe   : > { %v1664_v51 = vpop.permute.xlu1 %1663  ;;  %v1572_v9 = vadd.f32 %v1566_v43, %v1529_v15 }
 0x402   : > { %v3665_v52 = vpop.permute.xlu1 %1749 }
 0x406   : > { %v1496_v2 = vpop.permute.xlu1 %1495 }
 0x407   : > { %v1502_v44 = vsel %vm347_vm2, %v1496_v2, %v1500_v30  ;;  %v1504_v53 = vsel %vm347_vm2, %v1492_v45, %v1496_v2  ;;  %v1615_v45 = vadd.f32 %v1609_v59, %v1572_v9 }
 0x408   : > { %v1524_v58 = vmul.f32 %v3484_v5, %v1504_v53  ;;  %v1525_v26 = vmul.f32 %v3484_v5, %v1502_v44  ;;  %v1674_v5 = vsel %vm523_vm6, %v1668_v23, %v1672_v11 }
 0x409   : > { %v1658_v40 = vadd.f32 %v1652_v24, %v1615_v45 }
 0x40a   : > { %v1539_v30 = vpop.permute.xlu1 %1538  ;;  %v1530_v37 = vadd.f32 %v1524_v58, %v1487_v10  ;;  %v1531_v13 = vadd.f32 %v1525_v26, %v1488_v0  ;;  %v1796_v0 = vpop.permute.xlu0 %1795 }
 0x40b   : > { %v1545_v57 = vsel %vm391_vm3, %v1539_v30, %v1543_v12  ;;  %v1547_v62 = vsel %vm391_vm3, %v1535_v7, %v1539_v30  ;;  %v1635_v12 = vsel %vm479_vm5, %v1629_v48, %v1621_v19  ;;  %v1676_v7 = vsel %vm523_vm6, %v1664_v51, %v1668_v23 }
 0x40c   : > { %v1567_v33 = vmul.f32 %v3488_v63, %v1547_v62  ;;  %v1568_v41 = vmul.f32 %v3488_v63, %v1545_v57  ;;  %v1678_v63 = vsel %vm523_vm6, %v1672_v11, %v1664_v51  ;;  %v1696_v11 = vmul.f32 %v3512_v29, %v1674_v5 }
 0x40d   : > { %v1695_v51 = vmul.f32 %v3512_v29, %v1676_v7  ;;  %v1697_v53 = vmul.f32 %v3512_v29, %v1678_v63  ;;  %v1740_v23 = vmul.f32 %v3516_v47, %v1721_v55 }
 0x40e   : > { %v1582_v38 = vpop.permute.xlu1 %1581  ;;  %v1573_v43 = vadd.f32 %v1567_v33, %v1530_v37  ;;  %v1574_v31 = vadd.f32 %v1568_v41, %v1531_v13 }
 0x40f   : > { %v1588_v54 = vsel %vm435_vm4, %v1582_v38, %v1586_v20  ;;  %v1590_v15 = vsel %vm435_vm4, %v1578_v46, %v1582_v38  ;;  %v1719_v20 = vsel %vm567_vm7, %v1707_v21, %v1711_v32  ;;  %v1654_v46 = vmul.f32 %v3510_v17, %v1635_v12 }
 0x410   : > { %v1610_v48 = vmul.f32 %v3508_v25, %v1590_v15  ;;  %v1611_v19 = vmul.f32 %v3508_v25, %v1588_v54  ;;  %v1717_v25 = vsel %vm567_vm7, %v1711_v32, %v3654_v3  ;;  %v1701_v50 = vadd.f32 %v1695_v51, %v1658_v40 }
 0x411   : > { %v1764_v21 = vsel %vm611_vm8, %v3652_v27, %v3665_v52  ;;  %v1738_v3 = vmul.f32 %v3516_v47, %v1719_v20  ;;  %v1739_v29 = vmul.f32 %v3516_v47, %v1717_v25 }
 0x412   : > { %v1616_v2 = vadd.f32 %v1610_v48, %v1573_v43  ;;  %v1617_v9 = vadd.f32 %v1611_v19, %v1574_v31  ;;  %v1756_v44 = vpop.permute.xlu1 %1755  ;;  %v1783_v30 = vmul.f32 %v3522_v8, %v1764_v21 }
 0x413   : > { %v1759_v36 = vsel %vm611_vm8, %v3650_v34, %v1756_v44  ;;  %v1744_v45 = vadd.f32 %v1738_v3, %v1701_v50 }
 0x414   : > { %v1659_v17 = vadd.f32 %v1653_v6, %v1616_v2  ;;  %v1660_v59 = vadd.f32 %v1654_v46, %v1617_v9  ;;  %v1779_v39 = vmul.f32 %v3557_v61, %v1759_v36  ;;  %v2135_v6 = vld [vmem:[%s3829_s3 + $0x8] sm:$0xf] }
 0x416   : > { %v1703_v1 = vadd.f32 %v1697_v53, %v1660_v59  ;;  %v1785_v28 = vadd.f32 %v1779_v39, %v3590_v35  ;;  %v1702_v58 = vadd.f32 %v1696_v11, %v1659_v17  ;;  %v1754_v26 = vpop.permute.xlu1 %1753  ;;  %v1828_v11 = vpop.permute.xlu0 %1827 }
 0x417   : > { %v1760_v57 = vsel %vm611_vm8, %v1754_v26, %v3652_v27  ;;  %v1762_v62 = vsel %vm611_vm8, %v3665_v52, %v1754_v26 }
 0x418   : > { %v1746_v10 = vadd.f32 %v1740_v23, %v1703_v1  ;;  %v1745_v33 = vadd.f32 %v1739_v29, %v1702_v58  ;;  %v1781_v47 = vmul.f32 %v3522_v8, %v1762_v62  ;;  %v1782_v35 = vmul.f32 %v3522_v8, %v1760_v57 }
 0x419   : > { %v1804_v41 = vadd.f32 %v1796_v0, %v1785_v28 }
 0x41a   : > { %v1787_v4 = vadd.f32 %v1781_v47, %v1744_v45  ;;  %v1788_v5 = vadd.f32 %v1782_v35, %v1745_v33  ;;  %v1748_v24 = vpop.permute.xlu1 %1747  ;;  %v1789_v12 = vadd.f32 %v1783_v30, %v1746_v10 }
 0x41b   : > { %v1761_v27 = vsel %vm611_vm8, %v1748_v24, %v3650_v34  ;;  %v1763_v7 = vsel %vm611_vm8, %v1756_v44, %v1748_v24  ;;  %v1810_v32 = vmax.f32 %v1804_v41, 0.0 }
 0x41c   : > { %v1806_v52 = vadd.f32 %v3537_v18, %v1787_v4  ;;  %v1778_v37 = vmul.f32 %v3557_v61, %v1761_v27  ;;  %v1780_v13 = vmul.f32 %v3557_v61, %v1763_v7  ;;  %v1807_v8 = vadd.f32 %v3537_v18, %v1788_v5 }
 0x41d   : > { %v1808_v38 = vadd.f32 %v3537_v18, %v1789_v12  ;;  %v1816_v18 = vmul.f32 %v1810_v32, %v2845_v56 }
 0x41e   : > { %v1812_v40 = vmax.f32 %v1806_v52, 0.0  ;;  %v1784_v63 = vadd.f32 %v1778_v37, %v3592_v42  ;;  %v1786_v54 = vadd.f32 %v1780_v13, %v3578_v14  ;;  %v1813_v34 = vmax.f32 %v1807_v8, 0.0 }
 0x41f   : > { %v1814_v15 = vmax.f32 %v1808_v38, 0.0 }
 0x420   : > { %v1803_v22 = vadd.f32 %v1796_v0, %v1784_v63  ;;  %v1805_v43 = vadd.f32 %v1796_v0, %v1786_v54  ;;  %v1819_v31 = vmul.f32 %v1813_v34, %v2845_v56  ;;  %v1818_v48 = vmul.f32 %v1812_v40, %v2853_v49 }
 0x421   : > { %v1820_v61 = vmul.f32 %v1814_v15, %v3066_v16 }
 0x422   : > { %v1809_v19 = vmax.f32 %v1803_v22, 0.0  ;;  %v1811_v55 = vmax.f32 %v1805_v43, 0.0  ;;  %1861 = vmatprep.subr.mxu0 %v1819_v31 }
 0x423   : > { %2166 = vmatpush3.msra.mxu1 %v1820_v61  ;;  %1862 = vmatpush1.msra.mxu0 %v1818_v48 }
 0x424   : > { %1863 = vmatprep.subr.mxu0 %v1816_v18  ;;  %2167 = vmatprep.subr.mxu1 %v3210_v60  ;;  %v1815_v14 = vmul.f32 %v1809_v19, %v2853_v49  ;;  %v1817_v42 = vmul.f32 %v1811_v55, %v3066_v16 }
 0x426   : > { %1864 = vmatpush1.msra.mxu0 %v1815_v14  ;;  %2168 = vmatpush3.msra.mxu1 %v1817_v42 }
 0x427   : > { %2137 = vmatmul.mubr.msk.f32.vlgmr.msra.gmra.mxu0 %vm696_vm9, %v2135_v6  ;;  %2170 = vmatmul.mubr.msk.f32.vlgmr.msra.gmra.mxu1 %vm696_vm9, %v2135_v6 }
 0x4e7   : > { %v1899_v51 = vpop.f32.mrf.mxu0  ;;  %v1970_v20 = vpop.f32.mrf.mxu1 }
 0x4e8   : > { %v1900_v60 = vadd.f32 %v1899_v51, %v1828_v11  ;;  %v1971_v46 = vadd.f32 %v1970_v20, %v1828_v11 }
 0x4e9   : > { %v1901_v2 = vpop.f32.mrf.mxu0  ;;  %v2171_v9 = vpop.f32.mrf.mxu1 }
 0x4ea   : > { %v1974_v44 = vmax.f32 %v1900_v60, 0.0  ;;  %v1976_v25 = vmax.f32 %v1971_v46, 0.0  ;;  %v1902_v53 = vadd.f32 %v1901_v2, %v1828_v11 }
 0x4ec   : > { %v1977_v50 = vmul.f32 %v1974_v44, %v2853_v49  ;;  %v1979_v36 = vmul.f32 %v1976_v25, %v3066_v16  ;;  %v1975_v21 = vmax.f32 %v1902_v53, 0.0 }
 0x4ee   : > { %v1983_v17 = vrot.slane %v1977_v50, 4  ;;  %v1985_v59 = vrot.slane %v1979_v36, 4  ;;  %v1978_v39 = vmul.f32 %v1975_v21, %v2845_v56 }
 0x4f0   : > { %1989 = vst [vmem:[%s2488_s19 + $0x18] sm:$0xf0] %v1983_v17  ;;  %1991 = vst [vmem:[%s2488_s19 + $0x28] sm:$0xf0] %v1985_v59  ;;  %v1984_v49 = vrot.slane %v1978_v39, 4 }
 0x4f2   : > { %1990 = vst [vmem:[%s2488_s19 + $0x20] sm:$0xf0] %v1984_v49 }
 0x4f3   : > { %2324 = shalt.err (!%p2321_p3)
}
 0x4f4   : > { %s2325_s19 = scalar_lea.hbm %s3777_s29, 768  ;;  %s2329_s17 = scalar_lea.hbm %s3832_s6, 1536 }
 0x4f5   : > { %p2326_p4 = scmp.ne.s32.totalorder %s3777_s29, %s2325_s19  ;;  %p2330_p9 = scmp.lt.s32.totalorder %s3777_s29, %s3832_s6 }
 0x4f6   : > { %p2331_p10 = scmp.lt.s32.totalorder %s2329_s17, %s2325_s19 }
 0x4f7   : > { %p2327_p7 = pnand %p2326_p4, %p2460_p5 }
 0x4f8   : > { %p2332_p11 = por %p2331_p10, %p2330_p9 }
 0x4f9   : > { %p2328_p8 = pneg %p2327_p7 }
 0x4fb   : > { %p2333_p12 = pnand %p2332_p11, %p2328_p8 }
 0x4fd   : > { %2336 = shalt.err (!%p2333_p12)
}
 0x4fe   : > { %s2385_s11 = smov 384   ;;  %s2386_s20 = smov 24  }
 0x4ff   : > { %2175 = dma.vmem_to_hbm [thread:$0]  (%p2460_p5), %s3779_s26, 768, %s3777_s29, %s3786_s13, %s2385_s11, %s2385_s11, %s2386_s20  }
 0x500 PF: > { %p2181_p13 = scmp.ge.s32.totalorder %s2371_s24, 2  ;;  %s2021_s25 = sand.u32 1, %s2359_s21  }
 0x501   : > { %s2022_s12 = scalar_lea.sflag [#allocation3], %s2021_s25 }
 0x502   : > { %p2178_p0 = pnand %p2181_p13, %p2464_p6 }
 0x504   : > { %p2179_p1 = pneg %p2178_p0 }
 0x506   : > { %2354 = dma.done.wait (%p2179_p1), %s2022_s12, 768  }
 0x507   : > { %2356 = vsyncadd (%p2179_p1), %s2022_s12, 4294966528  ;;  %p16_p2 = scmp.ge.s32.totalorder %s2447_s27, 4   ;;  %s3859_s21 = smov %s2363_s22 }
 0x508   : > { %s3860_s22 = smov %s2367_s23  ;;  %s3861_s23 = smov %s2458_s30 }
 0x509   : > { %s3862_s24 = smov %s2447_s27  ;;  %18 = sbr.rel (!%p16_p2) target bundleno = 3 (0x3), region = 111 }
 0x50e   :  { %2027 = vsyncpa [#allocation3], 1 }
 0x50f   :  { %2029 = vsyncpa [#allocation3 + $0x1], 1 }

</bundles_post_ra>
